<compile_context>
chip_gen: v7x
topology: tpu7x:2x2x1
jax: 0.10.0
libtpu: 0.0.40
codegen_flags: <defaults>
</compile_context>

<pallas_src>
import functools
import math

import jax
import jax.numpy as jnp
from jax.experimental import pallas as pl
from jax.experimental.pallas import tpu as pltpu

EPS = 1e-5  # torch.nn.LayerNorm default


def _layernorm(x, w, b):
    mean = jnp.mean(x, axis=-1, keepdims=True)
    var = jnp.mean((x - mean) ** 2, axis=-1, keepdims=True)
    return (x - mean) * jax.lax.rsqrt(var + EPS) * w + b


# --------------------------------------------------------------------------
# Fused encoder kernel: embedding LN + L transformer layers + pooler.
# grid = (B // Bblk, L); the hidden state lives in hid_ref (constant block
# index across the layer axis -> resident in VMEM, written to HBM once).
# --------------------------------------------------------------------------
def _encoder_kernel(num_heads, q_tile,
                    xemb_ref, bias_ref, embw_ref, embb_ref,
                    wq_ref, bq_ref, wk_ref, bk_ref, wv_ref, bv_ref,
                    wo_ref, bo_ref, ln1w_ref, ln1b_ref,
                    w1_ref, b1_ref, w2_ref, b2_ref, ln2w_ref, ln2b_ref,
                    wp_ref, bp_ref,
                    hid_ref, pool_ref):
    l = pl.program_id(1)
    last_l = pl.num_programs(1) - 1

    Bblk, T, d = hid_ref.shape
    H = num_heads
    hd = d // H
    TQ = q_tile
    nqt = T // TQ

    # ---- layer 0: apply the embedding LayerNorm into the resident hidden ----
    @pl.when(l == 0)
    def _():
        xe = xemb_ref[...].astype(jnp.float32).reshape(Bblk * T, d)
        hid_ref[...] = _layernorm(xe, embw_ref[...], embb_ref[...]).reshape(Bblk, T, d)

    x3 = hid_ref[...]                                      # (Bblk, T, d) f32
    x_bf = x3.reshape(Bblk * T, d).astype(jnp.bfloat16)

    def to_heads(y2d):
        # (Bblk*T', d) f32 -> (Bblk*H, T', hd) bf16; one relayout per tensor.
        t = y2d.shape[0] // Bblk
        y4 = y2d.reshape(Bblk, t, H, hd)
        return jnp.swapaxes(y4, 1, 2).reshape(Bblk * H, t, hd).astype(jnp.bfloat16)

    # ---- K / V for the whole block (scale is pre-folded into the Q weights) ----
    kh = to_heads(jnp.dot(x_bf, wk_ref[0],
                          preferred_element_type=jnp.float32) + bk_ref[0])
    vh = to_heads(jnp.dot(x_bf, wv_ref[0],
                          preferred_element_type=jnp.float32) + bv_ref[0])

    negb = bias_ref[...].reshape(Bblk, 1, 1, T)            # additive f32 key mask

    # ---- query-tile loop: scores + everything row-wise downstream ----------
    for qt in range(nqt):
        r0 = qt * TQ
        xq3 = x3[:, r0:r0 + TQ, :]                         # (Bblk, TQ, d) f32
        xq2 = xq3.reshape(Bblk * TQ, d)
        qh = to_heads(jnp.dot(xq2.astype(jnp.bfloat16), wq_ref[0],
                              preferred_element_type=jnp.float32) + bq_ref[0])

        s = jnp.einsum('bqd,bkd->bqk', qh, kh,
                       preferred_element_type=jnp.float32)  # (Bblk*H, TQ, T)
        s = s.reshape(Bblk, H, TQ, T) + negb
        m = jnp.max(s, axis=-1, keepdims=True)
        e = jnp.exp(s - m)
        p = e * pl.reciprocal(jnp.sum(e, axis=-1, keepdims=True), approx=True)
        p = p.reshape(Bblk * H, TQ, T).astype(jnp.bfloat16)
        o = jnp.einsum('bqk,bkd->bqd', p, vh,
                       preferred_element_type=jnp.float32)  # (Bblk*H, TQ, hd)
        o2 = jnp.swapaxes(o.reshape(Bblk, H, TQ, hd), 1, 2).reshape(Bblk * TQ, d)

        attn = jnp.dot(o2.astype(jnp.bfloat16), wo_ref[0],
                       preferred_element_type=jnp.float32) + bo_ref[0]
        y = _layernorm(attn + xq2, ln1w_ref[0], ln1b_ref[0])

        h1 = jnp.dot(y.astype(jnp.bfloat16), w1_ref[0],
                     preferred_element_type=jnp.float32) + b1_ref[0]
        # Exact-erf GELU to match torch.nn.GELU(); tanh approx would be cheaper.
        h1 = 0.5 * h1 * (1.0 + jax.lax.erf(h1 * (1.0 / math.sqrt(2.0))))
        f = jnp.dot(h1.astype(jnp.bfloat16), w2_ref[0],
                    preferred_element_type=jnp.float32) + b2_ref[0]
        z = _layernorm(f + y, ln2w_ref[0], ln2b_ref[0])

        hid_ref[:, r0:r0 + TQ, :] = z.reshape(Bblk, TQ, d)

    # ---- last layer: fused pooler on the CLS rows ---------------------------
    @pl.when(l == last_l)
    def _():
        xcls = hid_ref[:, 0:1, :].reshape(Bblk, d)
        pool_ref[...] = jnp.tanh(
            jnp.dot(xcls.astype(jnp.bfloat16), wp_ref[...],
                    preferred_element_type=jnp.float32) + bp_ref[...])


# --------------------------------------------------------------------------
# Wrapper: tiling choices + pallas_call.
# --------------------------------------------------------------------------
def _pick_bblk(B, T, d):
    # Batch block must be a multiple of 8 (pooled-output sublane rule) or the
    # whole batch; cap the resident f32 hidden block at ~8 MiB.
    budget = 8 * 1024 * 1024
    for cand in (64, 32, 16, 8):
        if B % cand == 0 and cand * T * d * 4 <= budget:
            return cand
    if B % 8 == 0:
        return 8
    return B


def _pick_qtile(T):
    for cand in (256, 128, 64, 32, 16, 8):
        if T % cand == 0:
            return cand
    return T


def _vmem_limit_bytes():
    try:
        cap = pltpu.get_tpu_info().vmem_capacity_bytes
    except Exception:  # pragma: no cover - conservative fallback
        cap = 64 * 1024 * 1024
    # Leave ~16 MiB headroom for compiler scratch / double-buffered weight DMAs.
    return int(max(32 * 1024 * 1024, min(cap - 16 * 1024 * 1024, 112 * 1024 * 1024)))


def encoder_forward(x_emb, attn_bias, params, num_heads, num_layers):
    B, T, d = x_emb.shape
    Bblk = _pick_bblk(B, T, d)
    TQ = _pick_qtile(T)

    def stacked(arr):
        n = arr.ndim - 1
        return pl.BlockSpec((1,) + arr.shape[1:],
                            lambda b, l, _n=n: (l,) + (0,) * _n)

    def full(arr):
        n = arr.ndim
        return pl.BlockSpec(arr.shape, lambda b, l, _n=n: (0,) * _n)

    spec_x = pl.BlockSpec((Bblk, T, d), lambda b, l: (b, 0, 0))
    spec_bias = pl.BlockSpec((Bblk, 1, T), lambda b, l: (b, 0, 0))
    spec_pool = pl.BlockSpec((Bblk, d), lambda b, l: (b, 0))

    ins = [x_emb, attn_bias,
           params["emb_ln_w"], params["emb_ln_b"],
           params["wq"], params["bq"], params["wk"], params["bk"],
           params["wv"], params["bv"], params["wo"], params["bo"],
           params["ln1w"], params["ln1b"],
           params["w1"], params["b1"], params["w2"], params["b2"],
           params["ln2w"], params["ln2b"],
           params["pool_w"], params["pool_b"]]

    in_specs = [spec_x, spec_bias,
                full(params["emb_ln_w"]), full(params["emb_ln_b"]),
                stacked(params["wq"]), stacked(params["bq"]),
                stacked(params["wk"]), stacked(params["bk"]),
                stacked(params["wv"]), stacked(params["bv"]),
                stacked(params["wo"]), stacked(params["bo"]),
                stacked(params["ln1w"]), stacked(params["ln1b"]),
                stacked(params["w1"]), stacked(params["b1"]),
                stacked(params["w2"]), stacked(params["b2"]),
                stacked(params["ln2w"]), stacked(params["ln2b"]),
                full(params["pool_w"]), full(params["pool_b"])]

    kernel = functools.partial(_encoder_kernel, num_heads, TQ)
    hidden, pooled = pl.pallas_call(
        kernel,
        out_shape=(jax.ShapeDtypeStruct((B, T, d), jnp.float32),
                   jax.ShapeDtypeStruct((B, d), jnp.float32)),
        grid=(B // Bblk, num_layers),
        in_specs=in_specs,
        out_specs=[spec_x, spec_pool],
        compiler_params=pltpu.CompilerParams(
            # batch axis "parallel" (megacore on v7x); layer axis is a carried
            # reduction over the resident hidden state, hence "arbitrary".
            dimension_semantics=("parallel", "arbitrary"),
            vmem_limit_bytes=_vmem_limit_bytes()),
    )(*ins)
    return hidden, pooled


# --------------------------------------------------------------------------
# Parameter init (weights pre-transposed for y = x @ W^T layouts, matmul
# weights in bf16, stacked on a leading layer axis; 1/sqrt(hd) folded into Q).
# --------------------------------------------------------------------------
def init_params(key, config):
    V = config["vocab_size"]
    d = config["embedding_dim"]
    L = config["num_layers"]
    Tmax = config["max_context_length"]
    H = config["num_heads"]
    hd = d // H
    scale = 1.0 / math.sqrt(hd)

    ks = jax.random.split(key, 10)

    def nrm(k, shape):
        return 0.02 * jax.random.normal(k, shape, jnp.float32)

    wq = nrm(ks[3], (L, d, d)) * scale      # fold 1/sqrt(hd) into Q projection
    bq = jnp.zeros((L, 1, d), jnp.float32) * scale  # (fold into bias too)

    return {
        "word_emb": nrm(ks[0], (V, d)),
        "pos_emb": nrm(ks[1], (Tmax, d)),
        "seg_emb": nrm(ks[2], (2, d)),
        "emb_ln_w": jnp.ones((1, d), jnp.float32),
        "emb_ln_b": jnp.zeros((1, d), jnp.float32),
        "wq": wq.astype(jnp.bfloat16),
        "bq": bq,
        "wk": nrm(ks[4], (L, d, d)).astype(jnp.bfloat16),
        "bk": jnp.zeros((L, 1, d), jnp.float32),
        "wv": nrm(ks[5], (L, d, d)).astype(jnp.bfloat16),
        "bv": jnp.zeros((L, 1, d), jnp.float32),
        "wo": nrm(ks[6], (L, d, d)).astype(jnp.bfloat16),
        "bo": jnp.zeros((L, 1, d), jnp.float32),
        "ln1w": jnp.ones((L, 1, d), jnp.float32),
        "ln1b": jnp.zeros((L, 1, d), jnp.float32),
        "w1": nrm(ks[7], (L, d, 4 * d)).astype(jnp.bfloat16),
        "b1": jnp.zeros((L, 1, 4 * d), jnp.float32),
        "w2": nrm(ks[8], (L, 4 * d, d)).astype(jnp.bfloat16),
        "b2": jnp.zeros((L, 1, d), jnp.float32),
        "ln2w": jnp.ones((L, 1, d), jnp.float32),
        "ln2b": jnp.zeros((L, 1, d), jnp.float32),
        "pool_w": nrm(ks[9], (d, d)).astype(jnp.bfloat16),
        "pool_b": jnp.zeros((1, d), jnp.float32),
    }


def bert_forward(params, inputs, segment_ids, padding_mask, config):
    B, T = inputs.shape
    d = config["embedding_dim"]
    H = config["num_heads"]
    L = config["num_layers"]
    assert d % H == 0

    # Embedding lookups + sum (glue; gathers have no clean tile expression).
    x1 = jnp.take(params["word_emb"], inputs, axis=0)                  # (B, T, d)
    x2 = jnp.broadcast_to(params["pos_emb"][:T][None, :, :], (B, T, d))
    x3 = jnp.take(params["seg_emb"], segment_ids, axis=0)
    x_emb = (x1 + x2 + x3).astype(jnp.bfloat16)   # streamed to kernel as bf16

    # key_padding_mask -> additive f32 bias (0 for real, -1e30 for padded).
    attn_bias = jnp.where(padding_mask.astype(jnp.float32) > 0.5, 0.0, -1e30)
    attn_bias = attn_bias.reshape(B, 1, T).astype(jnp.float32)

    hidden, pooled = encoder_forward(x_emb, attn_bias, params, H, L)
    return {"hidden_states": hidden, "pooled_output": pooled}


if __name__ == "__main__":
    config = {
        "vocab_size": 100,
        "embedding_dim": 32,
        "num_heads": 4,
        "dropout_prob": 0.0,
        "max_context_length": 16,
        "num_layers": 2,
    }
    B, T = 2, 8

    key = jax.random.PRNGKey(0)
    kp, ki = jax.random.split(key)
    params = init_params(kp, config)

    inputs = jax.random.randint(ki, (B, T), 0, config["vocab_size"], dtype=jnp.int32)
    segment_ids = jnp.zeros((B, T), dtype=jnp.int32)
    padding_mask = jnp.ones((B, T), dtype=jnp.float32)

    fwd = jax.jit(lambda p, i, s, m: bert_forward(p, i, s, m, config))
    out = fwd(params, inputs, segment_ids, padding_mask)
    jax.block_until_ready(out)

    assert out["hidden_states"].shape == (B, T, config["embedding_dim"])
    assert out["pooled_output"].shape == (B, config["embedding_dim"])
    print("KERNEL_OK")
</pallas_src>

<mosaic_0001>
module attributes {stable_mosaic.version = 11 : i64} {
  func.func @_encoder_kernel(%arg0: i32, %arg1: i32, %arg2: memref<2x8x32xbf16, #tpu.memory_space<vmem>>, %arg3: memref<2x1x8xf32, #tpu.memory_space<vmem>>, %arg4: memref<1x32xf32, #tpu.memory_space<vmem>>, %arg5: memref<1x32xf32, #tpu.memory_space<vmem>>, %arg6: memref<1x32x32xbf16, #tpu.memory_space<vmem>>, %arg7: memref<1x1x32xf32, #tpu.memory_space<vmem>>, %arg8: memref<1x32x32xbf16, #tpu.memory_space<vmem>>, %arg9: memref<1x1x32xf32, #tpu.memory_space<vmem>>, %arg10: memref<1x32x32xbf16, #tpu.memory_space<vmem>>, %arg11: memref<1x1x32xf32, #tpu.memory_space<vmem>>, %arg12: memref<1x32x32xbf16, #tpu.memory_space<vmem>>, %arg13: memref<1x1x32xf32, #tpu.memory_space<vmem>>, %arg14: memref<1x1x32xf32, #tpu.memory_space<vmem>>, %arg15: memref<1x1x32xf32, #tpu.memory_space<vmem>>, %arg16: memref<1x32x128xbf16, #tpu.memory_space<vmem>>, %arg17: memref<1x1x128xf32, #tpu.memory_space<vmem>>, %arg18: memref<1x128x32xbf16, #tpu.memory_space<vmem>>, %arg19: memref<1x1x32xf32, #tpu.memory_space<vmem>>, %arg20: memref<1x1x32xf32, #tpu.memory_space<vmem>>, %arg21: memref<1x1x32xf32, #tpu.memory_space<vmem>>, %arg22: memref<32x32xbf16, #tpu.memory_space<vmem>>, %arg23: memref<1x32xf32, #tpu.memory_space<vmem>>, %arg24: memref<2x8x32xf32, #tpu.memory_space<vmem>>, %arg25: memref<2x32xf32, #tpu.memory_space<vmem>>) attributes {dimension_semantics = [#tpu.dimension_semantics<parallel>, #tpu.dimension_semantics<arbitrary>], iteration_bounds = array<i64: 1, 2>, scalar_prefetch = 0 : i64, scratch_operands = 0 : i64, tpu.core_type = #tpu.core_type<tc>, window_params = [{transform_indices = @transform_0, window_bounds = array<i64: 2, 8, 32>}, {transform_indices = @transform_1, window_bounds = array<i64: 2, 1, 8>}, {pipeline_mode = #tpu.pipeline_mode<synchronous>, transform_indices = @transform_2, window_bounds = array<i64: 1, 32>}, {pipeline_mode = #tpu.pipeline_mode<synchronous>, transform_indices = @transform_3, window_bounds = array<i64: 1, 32>}, {transform_indices = @transform_4, window_bounds = array<i64: 1, 32, 32>}, {transform_indices = @transform_5, window_bounds = array<i64: 1, 1, 32>}, {transform_indices = @transform_6, window_bounds = array<i64: 1, 32, 32>}, {transform_indices = @transform_7, window_bounds = array<i64: 1, 1, 32>}, {transform_indices = @transform_8, window_bounds = array<i64: 1, 32, 32>}, {transform_indices = @transform_9, window_bounds = array<i64: 1, 1, 32>}, {transform_indices = @transform_10, window_bounds = array<i64: 1, 32, 32>}, {transform_indices = @transform_11, window_bounds = array<i64: 1, 1, 32>}, {transform_indices = @transform_12, window_bounds = array<i64: 1, 1, 32>}, {transform_indices = @transform_13, window_bounds = array<i64: 1, 1, 32>}, {transform_indices = @transform_14, window_bounds = array<i64: 1, 32, 128>}, {transform_indices = @transform_15, window_bounds = array<i64: 1, 1, 128>}, {transform_indices = @transform_16, window_bounds = array<i64: 1, 128, 32>}, {transform_indices = @transform_17, window_bounds = array<i64: 1, 1, 32>}, {transform_indices = @transform_18, window_bounds = array<i64: 1, 1, 32>}, {transform_indices = @transform_19, window_bounds = array<i64: 1, 1, 32>}, {pipeline_mode = #tpu.pipeline_mode<synchronous>, transform_indices = @transform_20, window_bounds = array<i64: 32, 32>}, {pipeline_mode = #tpu.pipeline_mode<synchronous>, transform_indices = @transform_21, window_bounds = array<i64: 1, 32>}, {transform_indices = @transform_22, window_bounds = array<i64: 2, 8, 32>}, {transform_indices = @transform_23, window_bounds = array<i64: 2, 32>}]} {
    %c0_i32 = arith.constant 0 : i32
    %0 = arith.cmpi eq, %arg1, %c0_i32 : i32
    %1 = arith.extui %0 : i1 to i32
    %c0_i32_0 = arith.constant 0 : i32
    %2 = arith.cmpi ne, %1, %c0_i32_0 : i32
    scf.if %2 {
      %c0_80 = arith.constant 0 : index
      %c0_81 = arith.constant 0 : index
      %c0_82 = arith.constant 0 : index
      %154 = vector.load %arg2[%c0_80, %c0_81, %c0_82] : memref<2x8x32xbf16, #tpu.memory_space<vmem>>, vector<2x8x32xbf16>
      %155 = arith.extf %154 : vector<2x8x32xbf16> to vector<2x8x32xf32>
      %156 = vector.shape_cast %155 : vector<2x8x32xf32> to vector<16x32xf32>
      %c0_83 = arith.constant 0 : index
      %c0_84 = arith.constant 0 : index
      %157 = vector.load %arg4[%c0_83, %c0_84] : memref<1x32xf32, #tpu.memory_space<vmem>>, vector<1x32xf32>
      %c0_85 = arith.constant 0 : index
      %c0_86 = arith.constant 0 : index
      %158 = vector.load %arg5[%c0_85, %c0_86] : memref<1x32xf32, #tpu.memory_space<vmem>>, vector<1x32xf32>
      %cst_87 = arith.constant dense<0.000000e+00> : vector<16xf32>
      %159 = vector.multi_reduction <add>, %156, %cst_87 [1] : vector<16x32xf32> to vector<16xf32>
      %160 = vector.shape_cast %159 : vector<16xf32> to vector<16x1xf32>
      %cst_88 = arith.constant 3.200000e+01 : f32
      %161 = vector.broadcast %cst_88 : f32 to vector<16x1xf32>
      %162 = arith.divf %160, %161 : vector<16x1xf32>
      %163 = vector.broadcast %162 : vector<16x1xf32> to vector<16x32xf32>
      %164 = arith.subf %156, %163 : vector<16x32xf32>
      %165 = arith.mulf %164, %164 : vector<16x32xf32>
      %cst_89 = arith.constant dense<0.000000e+00> : vector<16xf32>
      %166 = vector.multi_reduction <add>, %165, %cst_89 [1] : vector<16x32xf32> to vector<16xf32>
      %167 = vector.shape_cast %166 : vector<16xf32> to vector<16x1xf32>
      %cst_90 = arith.constant 3.200000e+01 : f32
      %168 = vector.broadcast %cst_90 : f32 to vector<16x1xf32>
      %169 = arith.divf %167, %168 : vector<16x1xf32>
      %170 = vector.broadcast %162 : vector<16x1xf32> to vector<16x32xf32>
      %171 = arith.subf %156, %170 : vector<16x32xf32>
      %cst_91 = arith.constant 9.99999974E-6 : f32
      %172 = vector.broadcast %cst_91 : f32 to vector<16x1xf32>
      %173 = arith.addf %169, %172 : vector<16x1xf32>
      %174 = math.rsqrt %173 : vector<16x1xf32>
      %175 = vector.broadcast %174 : vector<16x1xf32> to vector<16x32xf32>
      %176 = arith.mulf %171, %175 : vector<16x32xf32>
      %177 = vector.broadcast %157 : vector<1x32xf32> to vector<16x32xf32>
      %178 = arith.mulf %176, %177 : vector<16x32xf32>
      %179 = vector.broadcast %158 : vector<1x32xf32> to vector<16x32xf32>
      %180 = arith.addf %178, %179 : vector<16x32xf32>
      %181 = vector.shape_cast %180 : vector<16x32xf32> to vector<2x8x32xf32>
      %c0_92 = arith.constant 0 : index
      %c0_93 = arith.constant 0 : index
      %c0_94 = arith.constant 0 : index
      %182 = vector.load %arg24[%c0_92, %c0_93, %c0_94] : memref<2x8x32xf32, #tpu.memory_space<vmem>>, vector<2x8x32xf32>
      tpu.vector_store %arg24[%c0_92, %c0_93, %c0_94], %181 {strides = array<i32>} : memref<2x8x32xf32, #tpu.memory_space<vmem>>, vector<2x8x32xf32>,
    } else {
    }
    %c0 = arith.constant 0 : index
    %c0_1 = arith.constant 0 : index
    %c0_2 = arith.constant 0 : index
    %3 = vector.load %arg24[%c0, %c0_1, %c0_2] : memref<2x8x32xf32, #tpu.memory_space<vmem>>, vector<2x8x32xf32>
    %4 = vector.shape_cast %3 : vector<2x8x32xf32> to vector<16x32xf32>
    %5 = arith.truncf %4 : vector<16x32xf32> to vector<16x32xbf16>
    %c0_3 = arith.constant 0 : index
    %c0_4 = arith.constant 0 : index
    %c0_5 = arith.constant 0 : index
    %6 = vector.load %arg8[%c0_3, %c0_4, %c0_5] : memref<1x32x32xbf16, #tpu.memory_space<vmem>>, vector<1x32x32xbf16>
    %7 = vector.shape_cast %6 : vector<1x32x32xbf16> to vector<32x32xbf16>
    %cst = arith.constant dense<0.000000e+00> : vector<16x32xf32>
    %8 = tpu.matmul %5, %7, %cst {dimension_numbers = #tpu.dot_dimension_numbers<[1], [0], [0], [1], [0, 0, 1, 1], [], []>} : vector<16x32xbf16>, vector<32x32xbf16>, vector<16x32xf32> -> vector<16x32xf32>
    %c0_6 = arith.constant 0 : index
    %c0_7 = arith.constant 0 : index
    %c0_8 = arith.constant 0 : index
    %9 = vector.load %arg9[%c0_6, %c0_7, %c0_8] : memref<1x1x32xf32, #tpu.memory_space<vmem>>, vector<1x1x32xf32>
    %10 = vector.shape_cast %9 : vector<1x1x32xf32> to vector<1x32xf32>
    %11 = vector.broadcast %10 : vector<1x32xf32> to vector<16x32xf32>
    %12 = arith.addf %8, %11 : vector<16x32xf32>
    %13 = vector.shape_cast %12 : vector<16x32xf32> to vector<2x8x4x8xf32>
    %14 = tpu.transpose %13, [0, 2, 1, 3] : vector<2x8x4x8xf32> -> vector<2x4x8x8xf32>
    %15 = vector.shape_cast %14 : vector<2x4x8x8xf32> to vector<8x8x8xf32>
    %16 = arith.truncf %15 : vector<8x8x8xf32> to vector<8x8x8xbf16>
    %c0_9 = arith.constant 0 : index
    %c0_10 = arith.constant 0 : index
    %c0_11 = arith.constant 0 : index
    %17 = vector.load %arg10[%c0_9, %c0_10, %c0_11] : memref<1x32x32xbf16, #tpu.memory_space<vmem>>, vector<1x32x32xbf16>
    %18 = vector.shape_cast %17 : vector<1x32x32xbf16> to vector<32x32xbf16>
    %cst_12 = arith.constant dense<0.000000e+00> : vector<16x32xf32>
    %19 = tpu.matmul %5, %18, %cst_12 {dimension_numbers = #tpu.dot_dimension_numbers<[1], [0], [0], [1], [0, 0, 1, 1], [], []>} : vector<16x32xbf16>, vector<32x32xbf16>, vector<16x32xf32> -> vector<16x32xf32>
    %c0_13 = arith.constant 0 : index
    %c0_14 = arith.constant 0 : index
    %c0_15 = arith.constant 0 : index
    %20 = vector.load %arg11[%c0_13, %c0_14, %c0_15] : memref<1x1x32xf32, #tpu.memory_space<vmem>>, vector<1x1x32xf32>
    %21 = vector.shape_cast %20 : vector<1x1x32xf32> to vector<1x32xf32>
    %22 = vector.broadcast %21 : vector<1x32xf32> to vector<16x32xf32>
    %23 = arith.addf %19, %22 : vector<16x32xf32>
    %24 = vector.shape_cast %23 : vector<16x32xf32> to vector<2x8x4x8xf32>
    %25 = tpu.transpose %24, [0, 2, 1, 3] : vector<2x8x4x8xf32> -> vector<2x4x8x8xf32>
    %26 = vector.shape_cast %25 : vector<2x4x8x8xf32> to vector<8x8x8xf32>
    %27 = arith.truncf %26 : vector<8x8x8xf32> to vector<8x8x8xbf16>
    %c0_16 = arith.constant 0 : index
    %c0_17 = arith.constant 0 : index
    %c0_18 = arith.constant 0 : index
    %28 = vector.load %arg3[%c0_16, %c0_17, %c0_18] : memref<2x1x8xf32, #tpu.memory_space<vmem>>, vector<2x1x8xf32>
    %29 = vector.shape_cast %28 : vector<2x1x8xf32> to vector<2x1x1x8xf32>
    %30 = vector.shape_cast %3 : vector<2x8x32xf32> to vector<16x32xf32>
    %31 = arith.truncf %30 : vector<16x32xf32> to vector<16x32xbf16>
    %c0_19 = arith.constant 0 : index
    %c0_20 = arith.constant 0 : index
    %c0_21 = arith.constant 0 : index
    %32 = vector.load %arg6[%c0_19, %c0_20, %c0_21] : memref<1x32x32xbf16, #tpu.memory_space<vmem>>, vector<1x32x32xbf16>
    %33 = vector.shape_cast %32 : vector<1x32x32xbf16> to vector<32x32xbf16>
    %cst_22 = arith.constant dense<0.000000e+00> : vector<16x32xf32>
    %34 = tpu.matmul %31, %33, %cst_22 {dimension_numbers = #tpu.dot_dimension_numbers<[1], [0], [0], [1], [0, 0, 1, 1], [], []>} : vector<16x32xbf16>, vector<32x32xbf16>, vector<16x32xf32> -> vector<16x32xf32>
    %c0_23 = arith.constant 0 : index
    %c0_24 = arith.constant 0 : index
    %c0_25 = arith.constant 0 : index
    %35 = vector.load %arg7[%c0_23, %c0_24, %c0_25] : memref<1x1x32xf32, #tpu.memory_space<vmem>>, vector<1x1x32xf32>
    %36 = vector.shape_cast %35 : vector<1x1x32xf32> to vector<1x32xf32>
    %37 = vector.broadcast %36 : vector<1x32xf32> to vector<16x32xf32>
    %38 = arith.addf %34, %37 : vector<16x32xf32>
    %39 = vector.shape_cast %38 : vector<16x32xf32> to vector<2x8x4x8xf32>
    %40 = tpu.transpose %39, [0, 2, 1, 3] : vector<2x8x4x8xf32> -> vector<2x4x8x8xf32>
    %41 = vector.shape_cast %40 : vector<2x4x8x8xf32> to vector<8x8x8xf32>
    %42 = arith.truncf %41 : vector<8x8x8xf32> to vector<8x8x8xbf16>
    "tpu.trace_start"() <{level = 10 : i32, message = "bqd,bkd->bqk"}> : () -> ()
    %cst_26 = arith.constant dense<0.000000e+00> : vector<8x8x8xf32>
    %43 = tpu.matmul %42, %16, %cst_26 {dimension_numbers = #tpu.dot_dimension_numbers<[2], [2], [1], [1], [0, 0, 0, 1, 1, 1], [0], [0]>} : vector<8x8x8xbf16>, vector<8x8x8xbf16>, vector<8x8x8xf32> -> vector<8x8x8xf32>
    "tpu.trace_stop"() : () -> ()
    %44 = vector.shape_cast %43 : vector<8x8x8xf32> to vector<2x4x8x8xf32>
    %45 = vector.broadcast %29 : vector<2x1x1x8xf32> to vector<2x4x8x8xf32>
    %46 = arith.addf %44, %45 : vector<2x4x8x8xf32>
    %cst_27 = arith.constant dense<0xFF800000> : vector<2x4x8xf32>
    %47 = vector.multi_reduction <maximumf>, %46, %cst_27 [3] : vector<2x4x8x8xf32> to vector<2x4x8xf32>
    %48 = vector.shape_cast %47 : vector<2x4x8xf32> to vector<2x4x8x1xf32>
    %49 = vector.broadcast %48 : vector<2x4x8x1xf32> to vector<2x4x8x8xf32>
    %50 = arith.subf %46, %49 : vector<2x4x8x8xf32>
    %51 = math.exp %50 : vector<2x4x8x8xf32>
    %cst_28 = arith.constant dense<0.000000e+00> : vector<2x4x8xf32>
    %52 = vector.multi_reduction <add>, %51, %cst_28 [3] : vector<2x4x8x8xf32> to vector<2x4x8xf32>
    %53 = vector.shape_cast %52 : vector<2x4x8xf32> to vector<2x4x8x1xf32>
    %54 = tpu.reciprocal %53 {approx = true} : vector<2x4x8x1xf32> -> vector<2x4x8x1xf32>
    %55 = vector.broadcast %54 : vector<2x4x8x1xf32> to vector<2x4x8x8xf32>
    %56 = arith.mulf %51, %55 : vector<2x4x8x8xf32>
    %57 = vector.shape_cast %56 : vector<2x4x8x8xf32> to vector<8x8x8xf32>
    %58 = arith.truncf %57 : vector<8x8x8xf32> to vector<8x8x8xbf16>
    "tpu.trace_start"() <{level = 10 : i32, message = "bqk,bkd->bqd"}> : () -> ()
    %cst_29 = arith.constant dense<0.000000e+00> : vector<8x8x8xf32>
    %59 = tpu.matmul %58, %27, %cst_29 {dimension_numbers = #tpu.dot_dimension_numbers<[2], [1], [1], [2], [0, 0, 0, 1, 1, 2], [0], [0]>} : vector<8x8x8xbf16>, vector<8x8x8xbf16>, vector<8x8x8xf32> -> vector<8x8x8xf32>
    "tpu.trace_stop"() : () -> ()
    %60 = vector.shape_cast %59 : vector<8x8x8xf32> to vector<2x4x8x8xf32>
    %61 = tpu.transpose %60, [0, 2, 1, 3] : vector<2x4x8x8xf32> -> vector<2x8x4x8xf32>
    %62 = vector.shape_cast %61 : vector<2x8x4x8xf32> to vector<16x32xf32>
    %63 = arith.truncf %62 : vector<16x32xf32> to vector<16x32xbf16>
    %c0_30 = arith.constant 0 : index
    %c0_31 = arith.constant 0 : index
    %c0_32 = arith.constant 0 : index
    %64 = vector.load %arg12[%c0_30, %c0_31, %c0_32] : memref<1x32x32xbf16, #tpu.memory_space<vmem>>, vector<1x32x32xbf16>
    %65 = vector.shape_cast %64 : vector<1x32x32xbf16> to vector<32x32xbf16>
    %cst_33 = arith.constant dense<0.000000e+00> : vector<16x32xf32>
    %66 = tpu.matmul %63, %65, %cst_33 {dimension_numbers = #tpu.dot_dimension_numbers<[1], [0], [0], [1], [0, 0, 1, 1], [], []>} : vector<16x32xbf16>, vector<32x32xbf16>, vector<16x32xf32> -> vector<16x32xf32>
    %c0_34 = arith.constant 0 : index
    %c0_35 = arith.constant 0 : index
    %c0_36 = arith.constant 0 : index
    %67 = vector.load %arg13[%c0_34, %c0_35, %c0_36] : memref<1x1x32xf32, #tpu.memory_space<vmem>>, vector<1x1x32xf32>
    %68 = vector.shape_cast %67 : vector<1x1x32xf32> to vector<1x32xf32>
    %69 = vector.broadcast %68 : vector<1x32xf32> to vector<16x32xf32>
    %70 = arith.addf %66, %69 : vector<16x32xf32>
    %71 = arith.addf %70, %30 : vector<16x32xf32>
    %c0_37 = arith.constant 0 : index
    %c0_38 = arith.constant 0 : index
    %c0_39 = arith.constant 0 : index
    %72 = vector.load %arg14[%c0_37, %c0_38, %c0_39] : memref<1x1x32xf32, #tpu.memory_space<vmem>>, vector<1x1x32xf32>
    %73 = vector.shape_cast %72 : vector<1x1x32xf32> to vector<1x32xf32>
    %c0_40 = arith.constant 0 : index
    %c0_41 = arith.constant 0 : index
    %c0_42 = arith.constant 0 : index
    %74 = vector.load %arg15[%c0_40, %c0_41, %c0_42] : memref<1x1x32xf32, #tpu.memory_space<vmem>>, vector<1x1x32xf32>
    %75 = vector.shape_cast %74 : vector<1x1x32xf32> to vector<1x32xf32>
    %cst_43 = arith.constant dense<0.000000e+00> : vector<16xf32>
    %76 = vector.multi_reduction <add>, %71, %cst_43 [1] : vector<16x32xf32> to vector<16xf32>
    %77 = vector.shape_cast %76 : vector<16xf32> to vector<16x1xf32>
    %cst_44 = arith.constant 3.200000e+01 : f32
    %78 = vector.broadcast %cst_44 : f32 to vector<16x1xf32>
    %79 = arith.divf %77, %78 : vector<16x1xf32>
    %80 = vector.broadcast %79 : vector<16x1xf32> to vector<16x32xf32>
    %81 = arith.subf %71, %80 : vector<16x32xf32>
    %82 = arith.mulf %81, %81 : vector<16x32xf32>
    %cst_45 = arith.constant dense<0.000000e+00> : vector<16xf32>
    %83 = vector.multi_reduction <add>, %82, %cst_45 [1] : vector<16x32xf32> to vector<16xf32>
    %84 = vector.shape_cast %83 : vector<16xf32> to vector<16x1xf32>
    %cst_46 = arith.constant 3.200000e+01 : f32
    %85 = vector.broadcast %cst_46 : f32 to vector<16x1xf32>
    %86 = arith.divf %84, %85 : vector<16x1xf32>
    %87 = vector.broadcast %79 : vector<16x1xf32> to vector<16x32xf32>
    %88 = arith.subf %71, %87 : vector<16x32xf32>
    %cst_47 = arith.constant 9.99999974E-6 : f32
    %89 = vector.broadcast %cst_47 : f32 to vector<16x1xf32>
    %90 = arith.addf %86, %89 : vector<16x1xf32>
    %91 = math.rsqrt %90 : vector<16x1xf32>
    %92 = vector.broadcast %91 : vector<16x1xf32> to vector<16x32xf32>
    %93 = arith.mulf %88, %92 : vector<16x32xf32>
    %94 = vector.broadcast %73 : vector<1x32xf32> to vector<16x32xf32>
    %95 = arith.mulf %93, %94 : vector<16x32xf32>
    %96 = vector.broadcast %75 : vector<1x32xf32> to vector<16x32xf32>
    %97 = arith.addf %95, %96 : vector<16x32xf32>
    %98 = arith.truncf %97 : vector<16x32xf32> to vector<16x32xbf16>
    %c0_48 = arith.constant 0 : index
    %c0_49 = arith.constant 0 : index
    %c0_50 = arith.constant 0 : index
    %99 = vector.load %arg16[%c0_48, %c0_49, %c0_50] : memref<1x32x128xbf16, #tpu.memory_space<vmem>>, vector<1x32x128xbf16>
    %100 = vector.shape_cast %99 : vector<1x32x128xbf16> to vector<32x128xbf16>
    %cst_51 = arith.constant dense<0.000000e+00> : vector<16x128xf32>
    %101 = tpu.matmul %98, %100, %cst_51 {dimension_numbers = #tpu.dot_dimension_numbers<[1], [0], [0], [1], [0, 0, 1, 1], [], []>} : vector<16x32xbf16>, vector<32x128xbf16>, vector<16x128xf32> -> vector<16x128xf32>
    %c0_52 = arith.constant 0 : index
    %c0_53 = arith.constant 0 : index
    %c0_54 = arith.constant 0 : index
    %102 = vector.load %arg17[%c0_52, %c0_53, %c0_54] : memref<1x1x128xf32, #tpu.memory_space<vmem>>, vector<1x1x128xf32>
    %103 = vector.shape_cast %102 : vector<1x1x128xf32> to vector<1x128xf32>
    %104 = vector.broadcast %103 : vector<1x128xf32> to vector<16x128xf32>
    %105 = arith.addf %101, %104 : vector<16x128xf32>
    %cst_55 = arith.constant 5.000000e-01 : f32
    %106 = vector.broadcast %cst_55 : f32 to vector<16x128xf32>
    %107 = arith.mulf %106, %105 : vector<16x128xf32>
    %cst_56 = arith.constant 0.707106769 : f32
    %108 = vector.broadcast %cst_56 : f32 to vector<16x128xf32>
    %109 = arith.mulf %105, %108 : vector<16x128xf32>
    %110 = math.erf %109 : vector<16x128xf32>
    %cst_57 = arith.constant 1.000000e+00 : f32
    %111 = vector.broadcast %cst_57 : f32 to vector<16x128xf32>
    %112 = arith.addf %111, %110 : vector<16x128xf32>
    %113 = arith.mulf %107, %112 : vector<16x128xf32>
    %114 = arith.truncf %113 : vector<16x128xf32> to vector<16x128xbf16>
    %c0_58 = arith.constant 0 : index
    %c0_59 = arith.constant 0 : index
    %c0_60 = arith.constant 0 : index
    %115 = vector.load %arg18[%c0_58, %c0_59, %c0_60] : memref<1x128x32xbf16, #tpu.memory_space<vmem>>, vector<1x128x32xbf16>
    %116 = vector.shape_cast %115 : vector<1x128x32xbf16> to vector<128x32xbf16>
    %cst_61 = arith.constant dense<0.000000e+00> : vector<16x32xf32>
    %117 = tpu.matmul %114, %116, %cst_61 {dimension_numbers = #tpu.dot_dimension_numbers<[1], [0], [0], [1], [0, 0, 1, 1], [], []>} : vector<16x128xbf16>, vector<128x32xbf16>, vector<16x32xf32> -> vector<16x32xf32>
    %c0_62 = arith.constant 0 : index
    %c0_63 = arith.constant 0 : index
    %c0_64 = arith.constant 0 : index
    %118 = vector.load %arg19[%c0_62, %c0_63, %c0_64] : memref<1x1x32xf32, #tpu.memory_space<vmem>>, vector<1x1x32xf32>
    %119 = vector.shape_cast %118 : vector<1x1x32xf32> to vector<1x32xf32>
    %120 = vector.broadcast %119 : vector<1x32xf32> to vector<16x32xf32>
    %121 = arith.addf %117, %120 : vector<16x32xf32>
    %122 = arith.addf %121, %97 : vector<16x32xf32>
    %c0_65 = arith.constant 0 : index
    %c0_66 = arith.constant 0 : index
    %c0_67 = arith.constant 0 : index
    %123 = vector.load %arg20[%c0_65, %c0_66, %c0_67] : memref<1x1x32xf32, #tpu.memory_space<vmem>>, vector<1x1x32xf32>
    %124 = vector.shape_cast %123 : vector<1x1x32xf32> to vector<1x32xf32>
    %c0_68 = arith.constant 0 : index
    %c0_69 = arith.constant 0 : index
    %c0_70 = arith.constant 0 : index
    %125 = vector.load %arg21[%c0_68, %c0_69, %c0_70] : memref<1x1x32xf32, #tpu.memory_space<vmem>>, vector<1x1x32xf32>
    %126 = vector.shape_cast %125 : vector<1x1x32xf32> to vector<1x32xf32>
    %cst_71 = arith.constant dense<0.000000e+00> : vector<16xf32>
    %127 = vector.multi_reduction <add>, %122, %cst_71 [1] : vector<16x32xf32> to vector<16xf32>
    %128 = vector.shape_cast %127 : vector<16xf32> to vector<16x1xf32>
    %cst_72 = arith.constant 3.200000e+01 : f32
    %129 = vector.broadcast %cst_72 : f32 to vector<16x1xf32>
    %130 = arith.divf %128, %129 : vector<16x1xf32>
    %131 = vector.broadcast %130 : vector<16x1xf32> to vector<16x32xf32>
    %132 = arith.subf %122, %131 : vector<16x32xf32>
    %133 = arith.mulf %132, %132 : vector<16x32xf32>
    %cst_73 = arith.constant dense<0.000000e+00> : vector<16xf32>
    %134 = vector.multi_reduction <add>, %133, %cst_73 [1] : vector<16x32xf32> to vector<16xf32>
    %135 = vector.shape_cast %134 : vector<16xf32> to vector<16x1xf32>
    %cst_74 = arith.constant 3.200000e+01 : f32
    %136 = vector.broadcast %cst_74 : f32 to vector<16x1xf32>
    %137 = arith.divf %135, %136 : vector<16x1xf32>
    %138 = vector.broadcast %130 : vector<16x1xf32> to vector<16x32xf32>
    %139 = arith.subf %122, %138 : vector<16x32xf32>
    %cst_75 = arith.constant 9.99999974E-6 : f32
    %140 = vector.broadcast %cst_75 : f32 to vector<16x1xf32>
    %141 = arith.addf %137, %140 : vector<16x1xf32>
    %142 = math.rsqrt %141 : vector<16x1xf32>
    %143 = vector.broadcast %142 : vector<16x1xf32> to vector<16x32xf32>
    %144 = arith.mulf %139, %143 : vector<16x32xf32>
    %145 = vector.broadcast %124 : vector<1x32xf32> to vector<16x32xf32>
    %146 = arith.mulf %144, %145 : vector<16x32xf32>
    %147 = vector.broadcast %126 : vector<1x32xf32> to vector<16x32xf32>
    %148 = arith.addf %146, %147 : vector<16x32xf32>
    %149 = vector.shape_cast %148 : vector<16x32xf32> to vector<2x8x32xf32>
    %c0_76 = arith.constant 0 : index
    %c0_77 = arith.constant 0 : index
    %c0_78 = arith.constant 0 : index
    %150 = vector.load %arg24[%c0_76, %c0_77, %c0_78] : memref<2x8x32xf32, #tpu.memory_space<vmem>>, vector<2x8x32xf32>
    tpu.vector_store %arg24[%c0_76, %c0_77, %c0_78], %149 {strides = array<i32>} : memref<2x8x32xf32, #tpu.memory_space<vmem>>, vector<2x8x32xf32>,
    %c1_i32 = arith.constant 1 : i32
    %151 = arith.cmpi eq, %arg1, %c1_i32 : i32
    %152 = arith.extui %151 : i1 to i32
    %c0_i32_79 = arith.constant 0 : i32
    %153 = arith.cmpi ne, %152, %c0_i32_79 : i32
    scf.if %153 {
      %c0_80 = arith.constant 0 : index
      %c0_81 = arith.constant 0 : index
      %c0_82 = arith.constant 0 : index
      %154 = vector.load %arg24[%c0_80, %c0_81, %c0_82] : memref<2x8x32xf32, #tpu.memory_space<vmem>>, vector<2x1x32xf32>
      %155 = vector.shape_cast %154 : vector<2x1x32xf32> to vector<2x32xf32>
      %156 = arith.truncf %155 : vector<2x32xf32> to vector<2x32xbf16>
      %c0_83 = arith.constant 0 : index
      %c0_84 = arith.constant 0 : index
      %157 = vector.load %arg22[%c0_83, %c0_84] : memref<32x32xbf16, #tpu.memory_space<vmem>>, vector<32x32xbf16>
      %cst_85 = arith.constant dense<0.000000e+00> : vector<2x32xf32>
      %158 = tpu.matmul %156, %157, %cst_85 {dimension_numbers = #tpu.dot_dimension_numbers<[1], [0], [0], [1], [0, 0, 1, 1], [], []>} : vector<2x32xbf16>, vector<32x32xbf16>, vector<2x32xf32> -> vector<2x32xf32>
      %c0_86 = arith.constant 0 : index
      %c0_87 = arith.constant 0 : index
      %159 = vector.load %arg23[%c0_86, %c0_87] : memref<1x32xf32, #tpu.memory_space<vmem>>, vector<1x32xf32>
      %160 = vector.broadcast %159 : vector<1x32xf32> to vector<2x32xf32>
      %161 = arith.addf %158, %160 : vector<2x32xf32>
      %162 = math.tanh %161 : vector<2x32xf32>
      %c0_88 = arith.constant 0 : index
      %c0_89 = arith.constant 0 : index
      %163 = vector.load %arg25[%c0_88, %c0_89] : memref<2x32xf32, #tpu.memory_space<vmem>>, vector<2x32xf32>
      tpu.vector_store %arg25[%c0_88, %c0_89], %162 {strides = array<i32>} : memref<2x32xf32, #tpu.memory_space<vmem>>, vector<2x32xf32>,
    } else {
    }
    return
  }
  func.func @transform_0(%arg0: i32, %arg1: i32) -> (i32, i32, i32) {
    %c0_i32 = arith.constant 0 : i32
    %c0_i32_0 = arith.constant 0 : i32
    %c0_i32_1 = arith.constant 0 : i32
    return %arg0, %c0_i32, %c0_i32_0 : i32, i32, i32
  }
  func.func @transform_1(%arg0: i32, %arg1: i32) -> (i32, i32, i32) {
    %c0_i32 = arith.constant 0 : i32
    %c0_i32_0 = arith.constant 0 : i32
    %c0_i32_1 = arith.constant 0 : i32
    return %arg0, %c0_i32, %c0_i32_0 : i32, i32, i32
  }
  func.func @transform_2(%arg0: i32, %arg1: i32) -> (i32, i32) {
    %c0_i32 = arith.constant 0 : i32
    %c0_i32_0 = arith.constant 0 : i32
    %c0_i32_1 = arith.constant 0 : i32
    return %c0_i32, %c0_i32_0 : i32, i32
  }
  func.func @transform_3(%arg0: i32, %arg1: i32) -> (i32, i32) {
    %c0_i32 = arith.constant 0 : i32
    %c0_i32_0 = arith.constant 0 : i32
    %c0_i32_1 = arith.constant 0 : i32
    return %c0_i32, %c0_i32_0 : i32, i32
  }
  func.func @transform_4(%arg0: i32, %arg1: i32) -> (i32, i32, i32) {
    %c0_i32 = arith.constant 0 : i32
    %c0_i32_0 = arith.constant 0 : i32
    %c0_i32_1 = arith.constant 0 : i32
    return %arg1, %c0_i32, %c0_i32_0 : i32, i32, i32
  }
  func.func @transform_5(%arg0: i32, %arg1: i32) -> (i32, i32, i32) {
    %c0_i32 = arith.constant 0 : i32
    %c0_i32_0 = arith.constant 0 : i32
    %c0_i32_1 = arith.constant 0 : i32
    return %arg1, %c0_i32, %c0_i32_0 : i32, i32, i32
  }
  func.func @transform_6(%arg0: i32, %arg1: i32) -> (i32, i32, i32) {
    %c0_i32 = arith.constant 0 : i32
    %c0_i32_0 = arith.constant 0 : i32
    %c0_i32_1 = arith.constant 0 : i32
    return %arg1, %c0_i32, %c0_i32_0 : i32, i32, i32
  }
  func.func @transform_7(%arg0: i32, %arg1: i32) -> (i32, i32, i32) {
    %c0_i32 = arith.constant 0 : i32
    %c0_i32_0 = arith.constant 0 : i32
    %c0_i32_1 = arith.constant 0 : i32
    return %arg1, %c0_i32, %c0_i32_0 : i32, i32, i32
  }
  func.func @transform_8(%arg0: i32, %arg1: i32) -> (i32, i32, i32) {
    %c0_i32 = arith.constant 0 : i32
    %c0_i32_0 = arith.constant 0 : i32
    %c0_i32_1 = arith.constant 0 : i32
    return %arg1, %c0_i32, %c0_i32_0 : i32, i32, i32
  }
  func.func @transform_9(%arg0: i32, %arg1: i32) -> (i32, i32, i32) {
    %c0_i32 = arith.constant 0 : i32
    %c0_i32_0 = arith.constant 0 : i32
    %c0_i32_1 = arith.constant 0 : i32
    return %arg1, %c0_i32, %c0_i32_0 : i32, i32, i32
  }
  func.func @transform_10(%arg0: i32, %arg1: i32) -> (i32, i32, i32) {
    %c0_i32 = arith.constant 0 : i32
    %c0_i32_0 = arith.constant 0 : i32
    %c0_i32_1 = arith.constant 0 : i32
    return %arg1, %c0_i32, %c0_i32_0 : i32, i32, i32
  }
  func.func @transform_11(%arg0: i32, %arg1: i32) -> (i32, i32, i32) {
    %c0_i32 = arith.constant 0 : i32
    %c0_i32_0 = arith.constant 0 : i32
    %c0_i32_1 = arith.constant 0 : i32
    return %arg1, %c0_i32, %c0_i32_0 : i32, i32, i32
  }
  func.func @transform_12(%arg0: i32, %arg1: i32) -> (i32, i32, i32) {
    %c0_i32 = arith.constant 0 : i32
    %c0_i32_0 = arith.constant 0 : i32
    %c0_i32_1 = arith.constant 0 : i32
    return %arg1, %c0_i32, %c0_i32_0 : i32, i32, i32
  }
  func.func @transform_13(%arg0: i32, %arg1: i32) -> (i32, i32, i32) {
    %c0_i32 = arith.constant 0 : i32
    %c0_i32_0 = arith.constant 0 : i32
    %c0_i32_1 = arith.constant 0 : i32
    return %arg1, %c0_i32, %c0_i32_0 : i32, i32, i32
  }
  func.func @transform_14(%arg0: i32, %arg1: i32) -> (i32, i32, i32) {
    %c0_i32 = arith.constant 0 : i32
    %c0_i32_0 = arith.constant 0 : i32
    %c0_i32_1 = arith.constant 0 : i32
    return %arg1, %c0_i32, %c0_i32_0 : i32, i32, i32
  }
  func.func @transform_15(%arg0: i32, %arg1: i32) -> (i32, i32, i32) {
    %c0_i32 = arith.constant 0 : i32
    %c0_i32_0 = arith.constant 0 : i32
    %c0_i32_1 = arith.constant 0 : i32
    return %arg1, %c0_i32, %c0_i32_0 : i32, i32, i32
  }
  func.func @transform_16(%arg0: i32, %arg1: i32) -> (i32, i32, i32) {
    %c0_i32 = arith.constant 0 : i32
    %c0_i32_0 = arith.constant 0 : i32
    %c0_i32_1 = arith.constant 0 : i32
    return %arg1, %c0_i32, %c0_i32_0 : i32, i32, i32
  }
  func.func @transform_17(%arg0: i32, %arg1: i32) -> (i32, i32, i32) {
    %c0_i32 = arith.constant 0 : i32
    %c0_i32_0 = arith.constant 0 : i32
    %c0_i32_1 = arith.constant 0 : i32
    return %arg1, %c0_i32, %c0_i32_0 : i32, i32, i32
  }
  func.func @transform_18(%arg0: i32, %arg1: i32) -> (i32, i32, i32) {
    %c0_i32 = arith.constant 0 : i32
    %c0_i32_0 = arith.constant 0 : i32
    %c0_i32_1 = arith.constant 0 : i32
    return %arg1, %c0_i32, %c0_i32_0 : i32, i32, i32
  }
  func.func @transform_19(%arg0: i32, %arg1: i32) -> (i32, i32, i32) {
    %c0_i32 = arith.constant 0 : i32
    %c0_i32_0 = arith.constant 0 : i32
    %c0_i32_1 = arith.constant 0 : i32
    return %arg1, %c0_i32, %c0_i32_0 : i32, i32, i32
  }
  func.func @transform_20(%arg0: i32, %arg1: i32) -> (i32, i32) {
    %c0_i32 = arith.constant 0 : i32
    %c0_i32_0 = arith.constant 0 : i32
    %c0_i32_1 = arith.constant 0 : i32
    return %c0_i32, %c0_i32_0 : i32, i32
  }
  func.func @transform_21(%arg0: i32, %arg1: i32) -> (i32, i32) {
    %c0_i32 = arith.constant 0 : i32
    %c0_i32_0 = arith.constant 0 : i32
    %c0_i32_1 = arith.constant 0 : i32
    return %c0_i32, %c0_i32_0 : i32, i32
  }
  func.func @transform_22(%arg0: i32, %arg1: i32) -> (i32, i32, i32) {
    %c0_i32 = arith.constant 0 : i32
    %c0_i32_0 = arith.constant 0 : i32
    %c0_i32_1 = arith.constant 0 : i32
    return %arg0, %c0_i32, %c0_i32_0 : i32, i32, i32
  }
  func.func @transform_23(%arg0: i32, %arg1: i32) -> (i32, i32) {
    %c0_i32 = arith.constant 0 : i32
    %c0_i32_0 = arith.constant 0 : i32
    return %arg0, %c0_i32 : i32, i32
  }
}

</mosaic_0001>

<bundles_post_ra>
// kernel: _lambda_.1
= control target key start
LH: loop header
LB: loop body
LE: loop exit
PB: predicated region body
PF: predicated region fallthrough
CT: control target
= control target key end

     0   :  { %s5373_s0 = inlined_call_operand.vmem [shape: bf16[2,8,32], index: 0, kind: input, shape index: {}]   ;;  %s5374_s1 = inlined_call_operand.vmem [shape: f32[2,1,8], index: 1, kind: input, shape index: {}]   ;;  %s5375_s2 = inlined_call_operand.vmem [shape: f32[1,32], index: 2, kind: input, shape index: {}]   ;;  %s5376_s3 = inlined_call_operand.vmem [shape: f32[1,32], index: 3, kind: input, shape index: {}]   ;;  %s5377_s4 = inlined_call_operand.vmem [shape: bf16[2,32,32], index: 4, kind: input, shape index: {}]   ;;  %s5378_s5 = inlined_call_operand.vmem [shape: f32[2,1,32], index: 5, kind: input, shape index: {}]   ;;  %s5379_s6 = inlined_call_operand.vmem [shape: bf16[2,32,32], index: 6, kind: input, shape index: {}]   ;;  %s5380_s7 = inlined_call_operand.vmem [shape: f32[2,1,32], index: 7, kind: input, shape index: {}]   ;;  %s5381_s8 = inlined_call_operand.vmem [shape: bf16[2,32,32], index: 8, kind: input, shape index: {}]   ;;  %s5382_s9 = inlined_call_operand.vmem [shape: f32[2,1,32], index: 9, kind: input, shape index: {}]   ;;  %s5383_s10 = inlined_call_operand.vmem [shape: bf16[2,32,32], index: 10, kind: input, shape index: {}]   ;;  %s5384_s11 = inlined_call_operand.vmem [shape: f32[2,1,32], index: 11, kind: input, shape index: {}]   ;;  %s5385_s12 = inlined_call_operand.vmem [shape: f32[2,1,32], index: 12, kind: input, shape index: {}]   ;;  %s5386_s13 = inlined_call_operand.vmem [shape: f32[2,1,32], index: 13, kind: input, shape index: {}]   ;;  %s5387_s14 = inlined_call_operand.vmem [shape: bf16[2,32,128], index: 14, kind: input, shape index: {}]   ;;  %s5388_s15 = inlined_call_operand.vmem [shape: f32[2,1,128], index: 15, kind: input, shape index: {}]   ;;  %s5389_s16 = inlined_call_operand.vmem [shape: bf16[2,128,32], index: 16, kind: input, shape index: {}]   ;;  %s5390_s17 = inlined_call_operand.vmem [shape: f32[2,1,32], index: 17, kind: input, shape index: {}]   ;;  %s5391_s18 = inlined_call_operand.vmem [shape: f32[2,1,32], index: 18, kind: input, shape index: {}]   ;;  %s5392_s19 = inlined_call_operand.vmem [shape: f32[2,1,32], index: 19, kind: input, shape index: {}]   ;;  %s5393_s20 = inlined_call_operand.vmem [shape: bf16[32,32], index: 20, kind: input, shape index: {}]   ;;  %s5394_s21 = inlined_call_operand.vmem [shape: f32[1,32], index: 21, kind: input, shape index: {}]   ;;  %s5395_s22 = inlined_call_operand.hbm [shape: f32[2,8,32], index: 22, kind: output, shape index: {0}]   ;;  %s5396_s23 = inlined_call_operand.hbm [shape: f32[2,32], index: 23, kind: output, shape index: {1}]  }
   0x1   :  { %5404 = sst [smem:[#allocation12_spill]] %s5373_s0 }
   0x2   :  { %5405 = sst [smem:[#allocation13_spill]] %s5374_s1 }
   0x3   :  { %5406 = sst [smem:[#allocation14_spill]] %s5375_s2 }
   0x4   :  { %5407 = sst [smem:[#allocation15_spill]] %s5376_s3 }
   0x5   :  { %5408 = sst [smem:[#allocation16_spill]] %s5377_s4 }
   0x6   :  { %5409 = sst [smem:[#allocation17_spill]] %s5378_s5 }
   0x7   :  { %5410 = sst [smem:[#allocation18_spill]] %s5379_s6 }
   0x8   :  { %5411 = sst [smem:[#allocation19_spill]] %s5380_s7 }
   0x9   :  { %5412 = sst [smem:[#allocation20_spill]] %s5381_s8 }
   0xa   :  { %5413 = sst [smem:[#allocation21_spill]] %s5383_s10 }
   0xb   :  { %5414 = sst [smem:[#allocation22_spill]] %s5387_s14 }
   0xc   :  { %5415 = sst [smem:[#allocation23_spill]] %s5392_s19 }
   0xd   :  { %5416 = sst [smem:[#allocation24_spill]] %s5393_s20 }
   0xe   :  { %5417 = sst [smem:[#allocation25_spill]] %s5394_s21 }
   0xf   :  { %5418 = sst [smem:[#allocation26_spill]] %s5395_s22 }
  0x10   :  { %5419 = sst [smem:[#allocation27_spill]] %s5396_s23 }
  0x11   :  { %29 = vsyncpa [#allocation3], 0 }
  0x12   :  { %30 = vsyncpa [#allocation5], 0  ;;  %s4709_s4 = smov 0   ;;  %s4711_s30 = smov 0  }
  0x13   :  { %s4713_s24 = smov 0  }
  0x14 LB: > { %5420 = sst [smem:[#allocation8_spill]] %s4564_s4  ;;  %s45_s5 = sadd.s32 1, %s4568_s30  ;;  %s4572_s24 = sphi %s4713_s24, %s36_s24   ;;  %s4568_s30 = sphi %s4711_s30, %s5457_s30   ;;  %s4564_s4 = sphi %s4709_s4, %s5456_s4  }
  0x15   : > { %5421 = sst [smem:[#allocation9_spill]] %s4568_s30  ;;  %p46_p0 = scmp.ge.s32.totalorder %s45_s5, 2 }
  0x16   : > { %5422 = sst [smem:[#allocation10_spill]] %s4572_s24  ;;  %p4025_p1 = scmp.ge.s32.totalorder %s4572_s24, 1 }
  0x17   : > { %p805_p2 = scmp.lt.s32.totalorder %s4572_s24, 3  ;;  %s5459_s5 = smov (%p46_p0, %s45_s5), 0 }
  0x18   : > { %5423 = sst [smem:[#allocation11_spill]] %s5459_s5 }
  0x19   : > { %p806_p3 = pnand %p4025_p1, %p805_p2 }
  0x1a   : > { %p939_p4 = scmp.lt.s32.totalorder (!%p806_p3), %s4564_s4, 1  ;;  %s5425_s3 = sld [smem:[#allocation16_spill]] (!%p806_p3) }
  0x1b   : > { %809 = sbr.rel (%p806_p3) target bundleno = 3358 (0xd1e), region = 108  ;;  %s5426_s30 = sld [smem:[#allocation18_spill]] (!%p806_p3) }
  0x1c   : > { %s5428_s8 = sld [smem:[#allocation20_spill]] (!%p806_p3)  ;;  %s5429_s10 = sld [smem:[#allocation21_spill]] (!%p806_p3) }
  0x1d   : > { %s5430_s14 = sld [smem:[#allocation22_spill]] (!%p806_p3)  ;;  %s5431_s24 = sld [smem:[#allocation23_spill]] (!%p806_p3) }
  0x1e   : > { %s5432_s29 = sld [smem:[#allocation8_spill]] (!%p806_p3) }
  0x22   : > { %s4732_s1 = scalar_select %p939_p4, %s4564_s4, 1 }
  0x24   : > { %s4119_s26 = sshll.u32 %s4732_s1, 4  ;;  %s992_s19 = scalar_lea.vmem %s5390_s17, %s4732_s1 }
  0x25   : > { %s4742_s0 = scalar_lea.vmem %s5425_s3, %s4119_s26  ;;  %s4747_s23 = scalar_lea.vmem %s5426_s30, %s4119_s26 }
  0x26   : > { %s4756_s2 = scalar_lea.vmem %s5428_s8, %s4119_s26  ;;  %s4765_s7 = scalar_lea.vmem %s5429_s10, %s4119_s26 }
  0x27   : > { %s4782_s27 = scalar_lea.vmem %s5430_s14, %s4119_s26  ;;  %s4124_s10 = sshll.u32 %s4732_s1, 6 }
  0x28   : > { %s4792_s5 = scalar_lea.vmem %s5389_s16, %s4124_s10  ;;  %s995_s8 = scalar_lea.vmem %s5391_s18, %s4732_s1 }
  0x29   : > { %s998_s14 = scalar_lea.vmem %s5431_s24, %s4732_s1  ;;  %p4038_p5 = scmp.ne.s32.totalorder %s5432_s29, 0 }
  0x2a   : > { %s5433_s30 = sld [smem:[#allocation12_spill]] (!%p4038_p5)  ;;  %vm1011_vm0 = vcmask (!%p4038_p5), 261120   ;;  %s5434_s28 = sld [smem:[#allocation14_spill]] (!%p4038_p5) }
  0x2b   : > { %1004 = sbr.rel (%p4038_p5) target bundleno = 369 (0x171), region = 112  ;;  %s5435_s22 = sld [smem:[#allocation15_spill]] (!%p4038_p5) }
  0x30   : > { %v4126_v0 = vld [vmem:[%s5433_s30] sm:$0xff] (!%p4038_p5)  }
  0x31   : > { %v4127_v1 = vunpack.c.l.bf16 (!%p4038_p5), %v4126_v0  ;;  %v4128_v2 = vunpack.c.h.bf16 (!%p4038_p5), %v4126_v0  ;;  %v4039_v22 = vld [vmem:[%s5434_s28] ss:$0 sm:$0xff] (!%p4038_p5) }
  0x32   : > { %v4040_v24 = vld [vmem:[%s5435_s22] ss:$0 sm:$0xff] }
  0x33   : > { %v1012_v3 = vsel %vm1011_vm0, %v4127_v1, 0.0  ;;  %v1015_v4 = vsel %vm1011_vm0, %v4128_v2, 0.0 }
  0x34   : > { %1013 = vadd.xlane.f32.xlu0 %v1012_v3 }
  0x38   : > { %1016 = vadd.xlane.f32.xlu0 %v1015_v4 }
  0xc1   : > { %v1014_v5 = vpop.xlane.xlu0 %1013 }
  0xc2   : > { %v1019_v6 = vmul.f32 0.03125, %v1014_v5 }
  0xc4   : > { %v1021_v7 = vsub.f32 %v4127_v1, %v1019_v6 }
  0xc5   : > { %v1017_v8 = vpop.xlane.xlu0 %1016 }
  0xc6   : > { %v1020_v9 = vmul.f32 0.03125, %v1017_v8  ;;  %v1023_v10 = vmul.f32 %v1021_v7, %v1021_v7 }
  0xc8   : > { %v1022_v11 = vsub.f32 %v4128_v2, %v1020_v9  ;;  %v1025_v12 = vsel %vm1011_vm0, %v1023_v10, 0.0 }
  0xc9   : > { %1026 = vadd.xlane.f32.xlu1 %v1025_v12 }
  0xca   : > { %v1024_v13 = vmul.f32 %v1022_v11, %v1022_v11 }
  0xcc   : > { %v1028_v14 = vsel %vm1011_vm0, %v1024_v13, 0.0 }
  0xcd   : > { %1029 = vadd.xlane.f32.xlu1 %v1028_v14 }
 0x156   : > { %v1027_v15 = vpop.xlane.xlu1 %1026 }
 0x157   : > { %v1031_v16 = vmul.f32 0.03125, %v1027_v15 }
 0x159   : > { %v1033_v17 = vadd.f32 1e-05, %v1031_v16 }
 0x15a   : > { %v1030_v18 = vpop.xlane.xlu1 %1029 }
 0x15b   : > { %4403 = vrsqrt.f32 %v1033_v17  ;;  %v1032_v19 = vmul.f32 0.03125, %v1030_v18 }
 0x15d   : > { %v1034_v20 = vadd.f32 1e-05, %v1032_v19 }
 0x15f   : > { %4405 = vrsqrt.f32 %v1034_v20 }
 0x165   : > { %v4404_v21 = vpop.eup %4403 }
 0x166   : > { %v1037_v23 = vmul.f32 %v4404_v21, %v1021_v7 }
 0x168   : > { %v1045_v25 = vmul.f32 %v4039_v22, %v1037_v23 }
 0x169   : > { %v4406_v26 = vpop.eup %4405 }
 0x16a   : > { %v1053_v27 = vadd.f32 %v4040_v24, %v1045_v25  ;;  %v1038_v28 = vmul.f32 %v4406_v26, %v1022_v11 }
 0x16c   : > { %1055 = vst.msk [vmem:[#allocation2] sm:$0xff] %vm1011_vm0, %v1053_v27  ;;  %v1046_v29 = vmul.f32 %v4039_v22, %v1038_v28 }
 0x16e   : > { %v1054_v30 = vadd.f32 %v4040_v24, %v1046_v29 }
 0x170   : > { %1056 = vst.msk [vmem:[#allocation2 + $0x8] sm:$0xff] %vm1011_vm0, %v1054_v30 }
 0x171 PF: > { %v4422_v31 = vld [vmem:[%s4747_s23] sm:$0xff]   ;;  %v4574_v32 = vmov 0.0   ;;  %v4423_v33 = vld [vmem:[%s4747_s23 + $0x8] sm:$0xff]   ;;  %vm4575_vm1 = vmmov 0   ;;  %vm1083_vm2 = vcmask 261120   ;;  %s5436_s21 = sld [smem:[#allocation19_spill]]  ;;  %s5438_s30 = scalar_lea.vmem %s5382_s9, %s4732_s1  ;;  %v1153_v0 = vlaneseq }
 0x172   : > { %4188 = vmatprep.subr.bf16.mxu0 %v4574_v32  ;;  %4212 = vmatprep.subr.bf16.mxu1 %v4574_v32  ;;  %v4424_v37 = vld [vmem:[%s4756_s2] sm:$0xff]   ;;  %v4425_v38 = vld [vmem:[%s4756_s2 + $0x8] sm:$0xff]   ;;  %s4577_s26 = smov 104   ;;  %s4578_s6 = smov 112   ;;  %v4579_v62 = vmov 1983009808  }
 0x173   : > { %4189 = vmatpush3.bf16.msra.mxu0 %v4422_v31  ;;  %4192 = vmatprep.mubr.msk.bf16.mxu0 %vm4575_vm1, %v4574_v32  ;;  %v1057_v34 = vld [vmem:[#allocation2] sm:$0xff]  ;;  %v4427_v40 = vld [vmem:[%s4742_s0 + $0x8] sm:$0xff]   ;;  %s5439_s28 = sld [smem:[#allocation17_spill]]  ;;  %v1151_v63 = vunpack.c.l.s4 %v4579_v62  ;;  %v4580_v1 = vmov 1934713408   ;;  %v1154_v4 = vshrl.u32 %v1153_v0, 7  ;;  %s5442_s29 = scalar_lea.vmem %s5384_s11, %s4732_s1 }
 0x174   : > { %4190 = vmatprep.subr.bf16.mxu0 %v4574_v32  ;;  %4214 = vmatprep.mubr.msk.bf16.mxu1 %vm4575_vm1, %v4574_v32  ;;  %v4426_v39 = vld [vmem:[%s4742_s0] sm:$0xff]   ;;  %s4576_s0 = smov 120   ;;  %v1183_v2 = vunpack.c.l.s4 %v4580_v1  ;;  %vm2158_vm3 = vcmask 64512   ;;  %s5441_s23 = sld [smem:[#allocation13_spill]]  ;;  %vm2646_vm4 = vcmask 1043456   ;;  %vm3310_vm5 = vcmask 130048  }
 0x175   : > { %v4049_v49 = vld [vmem:[%s5438_s30] ss:$0 sm:$0xff]  ;;  %v1152_v3 = vunpack.c.0.s8 %v1151_v63  ;;  %vm3313_vm6 = vcmask 195584   ;;  %s5443_s30 = scalar_lea.vmem %s5385_s12, %s4732_s1  ;;  %s5445_s22 = scalar_lea.vmem %s5388_s15, %s4732_s1 }
 0x176   : > { %v1184_v7 = vunpack.c.0.s8 %v1183_v2 }
 0x177   : > { %v1058_v35 = vld [vmem:[#allocation2 + $0x8] sm:$0xff]  ;;  %4191 = vmatpush3.bf16.msra.mxu0 %v4423_v33  ;;  %s5437_s4 = scalar_lea.vmem %s5436_s21, %s4732_s1  ;;  %v4897_v8 = vsub.s32 %v1152_v3, %v1154_v4 }
 0x178   : > { %v1059_v36 = vpack.c.bf16 %v1058_v35, %v1057_v34  ;;  %4196 = vmatprep.subr.bf16.mxu0 %v4574_v32  ;;  %v4041_v41 = vld [vmem:[%s5437_s4] ss:$0 sm:$0xff]  ;;  %v4899_v14 = vsub.s32 %v1184_v7, %v1154_v4  ;;  %s4581_s4 = smov 16  }
 0x179   : > { %s5440_s24 = scalar_lea.vmem %s5439_s28, %s4732_s1  ;;  %s5444_s28 = scalar_lea.vmem %s5386_s13, %s4732_s1 }
 0x17a   : > { %4193 = vmatmul.mubr.msk.bf16.vlgmr.msra.gmra.mrb[0].mxu0 %vm1083_vm2, %v1059_v36  ;;  %v4057_v53 = vld [vmem:[%s5440_s24] ss:$0 sm:$0xff] }
 0x17b   : > { %4197 = vmatpush3.bf16.msra.mxu0 %v4424_v37  ;;  %4200 = vmatprep.mubr.msk.bf16.mxu0 %vm4575_vm1, %v4574_v32 }
 0x17c   : > { %4198 = vmatprep.subr.bf16.mxu0 %v4574_v32 }
 0x17f   : > { %4199 = vmatpush3.bf16.msra.mxu0 %v4425_v38 }
 0x180   : > { %4204 = vmatprep.subr.bf16.mxu0 %v4574_v32 }
 0x182   : > { %4201 = vmatmul.mubr.msk.bf16.vlgmr.msra.gmra.mrb[4].mxu0 %vm1083_vm2, %v1059_v36 }
 0x183   : > { %4205 = vmatpush3.bf16.msra.mxu0 %v4426_v39  ;;  %4208 = vmatprep.mubr.msk.bf16.mxu0 %vm4575_vm1, %v4574_v32 }
 0x184   : > { %4206 = vmatprep.subr.bf16.mxu0 %v4574_v32 }
 0x187   : > { %4207 = vmatpush3.bf16.msra.mxu0 %v4427_v40 }
 0x188   : > { %4218 = vmatprep.subr.bf16.mxu0 %v4574_v32 }
 0x18a   : > { %4209 = vmatmul.mubr.msk.bf16.vlgmr.msra.gmra.mrb[8].mxu0 %vm1083_vm2, %v1059_v36 }
 0x18b   : > { %4220 = vmatprep.mubr.msk.bf16.mxu0 %vm4575_vm1, %v4574_v32 }
 0x24d   : > { %v1121_v42 = vpop.f32.mrb[0].mxu0 }
 0x24e   : > { %v1122_v43 = vadd.f32 %v4041_v41, %v1121_v42  ;;  %v4194_v44 = vpop.f32.mrb[1].mxu0 }
 0x24f   : > { %v1124_v45 = vpop.f32.mrb[2].mxu0 }
 0x250   : > { %1130 = vrot.lane.b32.xlu0 %v1122_v43, %s4576_s0  ;;  %v4195_v46 = vpop.f32.mrb[3].mxu0  ;;  %1142 = vrot.lane.b32.xlu1 %v1122_v43, %s4577_s26  ;;  %v4875_v59 = vadd.f32 %v4041_v41, %v1124_v45 }
 0x254   : > { %1136 = vrot.lane.b32.xlu0 %v1122_v43, %s4578_s6 }
 0x255   : > { %v1485_v47 = vpop.f32.mrb[4].mxu0 }
 0x256   : > { %v4202_v48 = vpop.f32.mrb[5].mxu0  ;;  %v4893_v61 = vadd.f32 %v4049_v49, %v1485_v47 }
 0x257   : > { %v1488_v50 = vpop.f32.mrb[6].mxu0 }
 0x258   : > { %v4862_v51 = vadd.f32 %v4049_v49, %v1488_v50  ;;  %v4203_v52 = vpop.f32.mrb[7].mxu0 }
 0x25d   : > { %v1851_v54 = vpop.f32.mrb[8].mxu0 }
 0x25e   : > { %v4869_v55 = vadd.f32 %v4057_v53, %v1851_v54  ;;  %v4210_v56 = vpop.f32.mrb[9].mxu0 }
 0x25f   : > { %v1854_v57 = vpop.f32.mrb[10].mxu0 }
 0x260   : > { %1866 = vrot.lane.b32.xlu0 %v4869_v55, %s4578_s6  ;;  %1860 = vrot.lane.b32.xlu1 %v4869_v55, %s4576_s0  ;;  %v4211_v58 = vpop.f32.mrb[11].mxu0  ;;  %v4885_v60 = vadd.f32 %v4057_v53, %v1854_v57 }
 0x264   : > { %1132 = vrot.lane.b32.xlu0 %v4875_v59, %s4576_s0  ;;  %1872 = vrot.lane.b32.xlu1 %v4869_v55, %s4577_s26 }
 0x268   : > { %1144 = vrot.lane.b32.xlu0 %v4875_v59, %s4577_s26  ;;  %1138 = vrot.lane.b32.xlu1 %v4875_v59, %s4578_s6 }
 0x26c   : > { %1868 = vrot.lane.b32.xlu0 %v4885_v60, %s4578_s6  ;;  %1862 = vrot.lane.b32.xlu1 %v4885_v60, %s4576_s0 }
 0x270   : > { %1874 = vrot.lane.b32.xlu1 %v4885_v60, %s4577_s26 }
 0x274   : > { %1494 = vrot.lane.b32.xlu1 %v4893_v61, %s4576_s0 }
 0x2c2   : > { %v1131_v5 = vpop.permute.xlu0 %1130  ;;  %v1143_v6 = vpop.permute.xlu1 %1142 }
 0x2c3   : > { %v1164_v9 = vcombine.low %v1131_v5, %v1143_v6  ;;  %v1165_v10 = vcombine.high %v1131_v5, %v1143_v6 }
 0x2c5   : > { %v1172_v15 = vrot.slane %v1164_v9, %v4897_v8  ;;  %v1179_v16 = vrot.slane %v1165_v10, %v4897_v8 }
 0x2c6   : > { %v1137_v11 = vpop.permute.xlu0 %1136 }
 0x2c7   : > { %v1148_v12 = vcombine.low %v1122_v43, %v1137_v11  ;;  %v1149_v13 = vcombine.high %v1122_v43, %v1137_v11 }
 0x2c9   : > { %v1156_v17 = vrot.slane %v1148_v12, %v4897_v8  ;;  %v1163_v18 = vrot.slane %v1149_v13, %v4897_v8 }
 0x2cb   : > { %v1180_v19 = vcombine.low %v1156_v17, %v1172_v15  ;;  %v1181_v20 = vcombine.high %v1156_v17, %v1172_v15  ;;  %v1196_v21 = vcombine.low %v1163_v18, %v1179_v16  ;;  %v1197_v22 = vcombine.high %v1163_v18, %v1179_v16 }
 0x2cd   : > { %v1188_v23 = vrot.slane %v1180_v19, %v4899_v14  ;;  %v1195_v24 = vrot.slane %v1181_v20, %v4899_v14  ;;  %v1204_v25 = vrot.slane %v1196_v21, %v4899_v14  ;;  %v1211_v26 = vrot.slane %v1197_v22, %v4899_v14 }
 0x2cf   : > { %v1284_v27 = vcombine.low %v1188_v23, %v1195_v24  ;;  %v4045_v28 = vcombine.high %v1188_v23, %v1195_v24  ;;  %v1300_v29 = vcombine.low %v1204_v25, %v1211_v26  ;;  %v4046_v30 = vcombine.high %v1204_v25, %v1211_v26 }
 0x2d1   : > { %v1291_v31 = vrot.slane %v1284_v27, %v4897_v8  ;;  %v1299_v33 = vrot.slane %v4045_v28, %v4897_v8  ;;  %v1307_v34 = vrot.slane %v1300_v29, %v4897_v8  ;;  %v1315_v35 = vrot.slane %v4046_v30, %v4897_v8 }
 0x2d2   : > { %v1867_v36 = vpop.permute.xlu0 %1866  ;;  %v1861_v37 = vpop.permute.xlu1 %1860 }
 0x2d3   : > { %v1316_v38 = vcombine.low %v1291_v31, %v1299_v33  ;;  %v1332_v39 = vcombine.low %v1307_v34, %v1315_v35  ;;  %v1317_v40 = vcombine.high %v1291_v31, %v1299_v33  ;;  %v1333_v41 = vcombine.high %v1307_v34, %v1315_v35 }
 0x2d4   : > { %v1878_v42 = vcombine.low %v4869_v55, %v1867_v36  ;;  %v1879_v43 = vcombine.high %v4869_v55, %v1867_v36 }
 0x2d5   : > { %v1324_v44 = vrot.slane %v1316_v38, %v4899_v14  ;;  %v1340_v45 = vrot.slane %v1332_v39, %v4899_v14  ;;  %v1331_v48 = vrot.slane %v1317_v40, %v4899_v14  ;;  %v1347_v49 = vrot.slane %v1333_v41, %v4899_v14 }
 0x2d6   : > { %v1133_v46 = vpop.permute.xlu0 %1132  ;;  %v1873_v47 = vpop.permute.xlu1 %1872  ;;  %v1886_v56 = vrot.slane %v1878_v42, %v4897_v8  ;;  %v1893_v57 = vrot.slane %v1879_v43, %v4897_v8 }
 0x2d7   : > { %v1894_v50 = vcombine.low %v1861_v37, %v1873_v47  ;;  %v1895_v52 = vcombine.high %v1861_v37, %v1873_v47  ;;  %v1348_v53 = vcombine.low %v1324_v44, %v1340_v45  ;;  %v1349_v54 = vcombine.high %v1324_v44, %v1340_v45 }
 0x2d8   : > { %v4923_v2 = vcombine.low %v1331_v48, %v1347_v49  ;;  %v4925_v3 = vcombine.high %v1331_v48, %v1347_v49 }
 0x2d9   : > { %v1902_v55 = vrot.slane %v1894_v50, %v4897_v8  ;;  %v1909_v58 = vrot.slane %v1895_v52, %v4897_v8  ;;  %v1420_v0 = vpack.c.bf16 %v1348_v53, %v1348_v53  ;;  %v1421_v1 = vpack.c.bf16 %v1349_v54, %v1349_v54 }
 0x2da   : > { %v1145_v62 = vpop.permute.xlu0 %1144  ;;  %v1139_v63 = vpop.permute.xlu1 %1138  ;;  %v1422_v45 = vpack.c.bf16 %v4923_v2, %v4923_v2 }
 0x2db   : > { %v1910_v4 = vcombine.low %v1886_v56, %v1902_v55  ;;  %v1911_v5 = vcombine.high %v1886_v56, %v1902_v55  ;;  %v1926_v6 = vcombine.low %v1893_v57, %v1909_v58  ;;  %v1927_v7 = vcombine.high %v1893_v57, %v1909_v58 }
 0x2dc   : > { %v1232_v9 = vcombine.low %v1133_v46, %v1145_v62  ;;  %v1233_v10 = vcombine.high %v1133_v46, %v1145_v62  ;;  %v1216_v11 = vcombine.low %v4875_v59, %v1139_v63  ;;  %v1217_v12 = vcombine.high %v4875_v59, %v1139_v63 }
 0x2dd   : > { %v1918_v13 = vrot.slane %v1910_v4, %v4899_v14  ;;  %v1925_v15 = vrot.slane %v1911_v5, %v4899_v14  ;;  %v1934_v16 = vrot.slane %v1926_v6, %v4899_v14  ;;  %v1941_v17 = vrot.slane %v1927_v7, %v4899_v14 }
 0x2de   : > { %v1240_v18 = vrot.slane %v1232_v9, %v4897_v8  ;;  %v1247_v19 = vrot.slane %v1233_v10, %v4897_v8  ;;  %v1224_v20 = vrot.slane %v1216_v11, %v4897_v8  ;;  %v1231_v21 = vrot.slane %v1217_v12, %v4897_v8  ;;  %v1863_v22 = vpop.permute.xlu1 %1862  ;;  %v1869_v39 = vpop.permute.xlu0 %1868 }
 0x2df   : > { %v2014_v23 = vcombine.low %v1918_v13, %v1925_v15  ;;  %v4061_v24 = vcombine.high %v1918_v13, %v1925_v15  ;;  %v2030_v59 = vcombine.low %v1934_v16, %v1941_v17  ;;  %v4062_v25 = vcombine.high %v1934_v16, %v1941_v17 }
 0x2e0   : > { %v1248_v26 = vcombine.low %v1224_v20, %v1240_v18  ;;  %v1249_v27 = vcombine.high %v1224_v20, %v1240_v18  ;;  %v1264_v28 = vcombine.low %v1231_v21, %v1247_v19  ;;  %v1265_v29 = vcombine.high %v1231_v21, %v1247_v19 }
 0x2e1   : > { %v2021_v30 = vrot.slane %v2014_v23, %v4897_v8  ;;  %v2029_v31 = vrot.slane %v4061_v24, %v4897_v8  ;;  %v2037_v33 = vrot.slane %v2030_v59, %v4897_v8  ;;  %v2045_v34 = vrot.slane %v4062_v25, %v4897_v8 }
 0x2e2   : > { %v1256_v35 = vrot.slane %v1248_v26, %v4899_v14  ;;  %v1263_v36 = vrot.slane %v1249_v27, %v4899_v14  ;;  %v1272_v37 = vrot.slane %v1264_v28, %v4899_v14  ;;  %v1279_v38 = vrot.slane %v1265_v29, %v4899_v14  ;;  %v1875_v40 = vpop.permute.xlu1 %1874 }
 0x2e3   : > { %v2163_v41 = vsel %vm2158_vm3, %v1420_v0, 0  ;;  %v2209_v42 = vsel %vm2158_vm3, %v1421_v1, 0  ;;  %v1423_v46 = vpack.c.bf16 %v4925_v3, %v4925_v3  ;;  %v1946_v47 = vcombine.low %v4885_v60, %v1869_v39 }
 0x2e4   : > { %v1352_v43 = vcombine.low %v1256_v35, %v1263_v36  ;;  %v4047_v44 = vcombine.high %v1256_v35, %v1263_v36  ;;  %4213 = vmatpush3.bf16.xpose.msra.mxu1 %v2163_v41  ;;  %4219 = vmatpush3.bf16.xpose.msra.mxu0 %v2209_v42  ;;  %v1947_v48 = vcombine.high %v4885_v60, %v1869_v39  ;;  %v2255_v29 = vsel %vm2158_vm3, %v1422_v45, 0 }
 0x2e5   : > { %v1962_v49 = vcombine.low %v1863_v22, %v1875_v40  ;;  %v1963_v50 = vcombine.high %v1863_v22, %v1875_v40  ;;  %v2047_v52 = vcombine.high %v2021_v30, %v2029_v31  ;;  %v2063_v53 = vcombine.high %v2037_v33, %v2045_v34  ;;  %4224 = vmatprep.subr.bf16.mxu1 %v4574_v32 }
 0x2e6   : > { %v1368_v54 = vcombine.low %v1272_v37, %v1279_v38  ;;  %v4048_v56 = vcombine.high %v1272_v37, %v1279_v38  ;;  %v1954_v57 = vrot.slane %v1946_v47, %v4897_v8  ;;  %v1961_v55 = vrot.slane %v1947_v48, %v4897_v8  ;;  %4230 = vmatprep.subr.bf16.mxu0 %v4574_v32 }
 0x2e7   : > { %v1970_v58 = vrot.slane %v1962_v49, %v4897_v8  ;;  %v1977_v62 = vrot.slane %v1963_v50, %v4897_v8  ;;  %v1359_v60 = vrot.slane %v1352_v43, %v4897_v8  ;;  %v1367_v63 = vrot.slane %v4047_v44, %v4897_v8 }
 0x2e8   : > { %v2046_v0 = vcombine.low %v2021_v30, %v2029_v31  ;;  %v2062_v1 = vcombine.low %v2037_v33, %v2045_v34  ;;  %v1375_v6 = vrot.slane %v1368_v54, %v4897_v8  ;;  %v1383_v7 = vrot.slane %v4048_v56, %v4897_v8 }
 0x2e9   : > { %v1978_v2 = vcombine.low %v1954_v57, %v1970_v58  ;;  %v1979_v3 = vcombine.high %v1954_v57, %v1970_v58  ;;  %v1994_v4 = vcombine.low %v1961_v55, %v1977_v62  ;;  %v1995_v5 = vcombine.high %v1961_v55, %v1977_v62 }
 0x2ea   : > { %v2054_v9 = vrot.slane %v2046_v0, %v4899_v14  ;;  %v2070_v10 = vrot.slane %v2062_v1, %v4899_v14  ;;  %v2061_v18 = vrot.slane %v2047_v52, %v4899_v14  ;;  %v2077_v19 = vrot.slane %v2063_v53, %v4899_v14 }
 0x2eb   : > { %v1986_v11 = vrot.slane %v1978_v2, %v4899_v14  ;;  %v1993_v12 = vrot.slane %v1979_v3, %v4899_v14  ;;  %v2002_v13 = vrot.slane %v1994_v4, %v4899_v14  ;;  %v2009_v15 = vrot.slane %v1995_v5, %v4899_v14 }
 0x2ec   : > { %v2078_v16 = vcombine.low %v2054_v9, %v2070_v10  ;;  %v2079_v17 = vcombine.high %v2054_v9, %v2070_v10  ;;  %v1384_v30 = vcombine.low %v1359_v60, %v1367_v63  ;;  %v1400_v31 = vcombine.low %v1375_v6, %v1383_v7 }
 0x2ed   : > { %v2082_v20 = vcombine.low %v1986_v11, %v1993_v12  ;;  %v4063_v21 = vcombine.high %v1986_v11, %v1993_v12  ;;  %v2098_v22 = vcombine.low %v2002_v13, %v2009_v15  ;;  %v4064_v23 = vcombine.high %v2002_v13, %v2009_v15  ;;  %v4073_v12 = vld [vmem:[%s5441_s23] ss:$0 sm:$0xff] }
 0x2ee   : > { %v2150_v24 = vpack.c.bf16 %v2078_v16, %v2078_v16  ;;  %v2151_v59 = vpack.c.bf16 %v2079_v17, %v2079_v17  ;;  %v1385_v33 = vcombine.high %v1359_v60, %v1367_v63  ;;  %v2301_v35 = vsel %vm2158_vm3, %v1423_v46, 0 }
 0x2ef   : > { %v2089_v25 = vrot.slane %v2082_v20, %v4897_v8  ;;  %v2097_v26 = vrot.slane %v4063_v21, %v4897_v8  ;;  %v2105_v27 = vrot.slane %v2098_v22, %v4897_v8  ;;  %v2113_v28 = vrot.slane %v4064_v23, %v4897_v8 }
 0x2f0   : > { %4215 = vmatmul.mubr.msk.bf16.vlgmr.msra.gmra.mrb[0].mxu1 %vm2158_vm3, %v2150_v24  ;;  %4221 = vmatmul.mubr.msk.bf16.vlgmr.msra.gmra.mrb[12].mxu0 %vm2158_vm3, %v2151_v59  ;;  %v2080_v36 = vcombine.low %v2061_v18, %v2077_v19  ;;  %v1392_v38 = vrot.slane %v1384_v30, %v4899_v14  ;;  %v1408_v39 = vrot.slane %v1400_v31, %v4899_v14 }
 0x2f1   : > { %v2114_v34 = vcombine.low %v2089_v25, %v2097_v26  ;;  %4225 = vmatpush3.bf16.xpose.msra.mxu1 %v2255_v29  ;;  %v2130_v37 = vcombine.low %v2105_v27, %v2113_v28  ;;  %4231 = vmatpush3.bf16.xpose.msra.mxu0 %v2301_v35  ;;  %v2081_v40 = vcombine.high %v2061_v18, %v2077_v19 }
 0x2f2   : > { %4226 = vmatprep.mubr.msk.bf16.mxu1 %vm4575_vm1, %v4574_v32  ;;  %4232 = vmatprep.mubr.msk.bf16.mxu0 %vm4575_vm1, %v4574_v32  ;;  %v1401_v41 = vcombine.high %v1375_v6, %v1383_v7  ;;  %v1416_v42 = vcombine.low %v1392_v38, %v1408_v39  ;;  %v1417_v43 = vcombine.high %v1392_v38, %v1408_v39 }
 0x2f3   : > { %4236 = vmatprep.subr.bf16.mxu1 %v4574_v32  ;;  %4242 = vmatprep.subr.bf16.mxu0 %v4574_v32  ;;  %v1399_v44 = vrot.slane %v1385_v33, %v4899_v14  ;;  %v2152_v45 = vpack.c.bf16 %v2080_v36, %v2080_v36  ;;  %v2122_v49 = vrot.slane %v2114_v34, %v4899_v14 }
 0x2f4   : > { %v1415_v46 = vrot.slane %v1401_v41, %v4899_v14  ;;  %v1424_v47 = vpack.c.bf16 %v1416_v42, %v1416_v42  ;;  %v1425_v48 = vpack.c.bf16 %v1417_v43, %v1417_v43  ;;  %v2138_v50 = vrot.slane %v2130_v37, %v4899_v14  ;;  %v4074_v37 = vld [vmem:[%s5441_s23 + $0x1] ss:$0 sm:$0xff] }
 0x2f5   : > { %v2153_v52 = vpack.c.bf16 %v2081_v40, %v2081_v40  ;;  %v2115_v55 = vcombine.high %v2089_v25, %v2097_v26  ;;  %v2131_v58 = vcombine.high %v2105_v27, %v2113_v28 }
 0x2f6   : > { %v2347_v53 = vsel %vm2158_vm3, %v1424_v47, 0  ;;  %v1418_v54 = vcombine.low %v1399_v44, %v1415_v46  ;;  %v2393_v56 = vsel %vm2158_vm3, %v1425_v48, 0  ;;  %v1419_v57 = vcombine.high %v1399_v44, %v1415_v46 }
 0x2f7   : > { %v2146_v62 = vcombine.low %v2122_v49, %v2138_v50  ;;  %v2147_v60 = vcombine.high %v2122_v49, %v2138_v50  ;;  %v2129_v2 = vrot.slane %v2115_v55, %v4899_v14  ;;  %v2145_v3 = vrot.slane %v2131_v58, %v4899_v14 }
 0x2f8   : > { %4227 = vmatmul.mubr.msk.bf16.vlgmr.msra.gmra.mrb[4].mxu1 %vm2158_vm3, %v2152_v45  ;;  %4233 = vmatmul.mubr.msk.bf16.vlgmr.msra.gmra.mrb[16].mxu0 %vm2158_vm3, %v2153_v52  ;;  %v1426_v63 = vpack.c.bf16 %v1418_v54, %v1418_v54  ;;  %v1427_v0 = vpack.c.bf16 %v1419_v57, %v1419_v57 }
 0x2f9   : > { %4237 = vmatpush3.bf16.xpose.msra.mxu1 %v2347_v53  ;;  %4243 = vmatpush3.bf16.xpose.msra.mxu0 %v2393_v56  ;;  %v2154_v1 = vpack.c.bf16 %v2146_v62, %v2146_v62  ;;  %v2155_v4 = vpack.c.bf16 %v2147_v60, %v2147_v60  ;;  %v2148_v7 = vcombine.low %v2129_v2, %v2145_v3 }
 0x2fa   : > { %4238 = vmatprep.mubr.msk.bf16.mxu1 %vm4575_vm1, %v4574_v32  ;;  %4244 = vmatprep.mubr.msk.bf16.mxu0 %vm4575_vm1, %v4574_v32  ;;  %v2439_v5 = vsel %vm2158_vm3, %v1426_v63, 0  ;;  %v2485_v6 = vsel %vm2158_vm3, %v1427_v0, 0  ;;  %v2149_v9 = vcombine.high %v2129_v2, %v2145_v3  ;;  %v1495_v2 = vpop.permute.xlu1 %1494 }
 0x2fb   : > { %4248 = vmatprep.subr.bf16.mxu1 %v4574_v32  ;;  %4254 = vmatprep.subr.bf16.mxu0 %v4574_v32  ;;  %v2156_v10 = vpack.c.bf16 %v2148_v7, %v2148_v7 }
 0x2fc   : > { %v2157_v11 = vpack.c.bf16 %v2149_v9, %v2149_v9 }
 0x300   : > { %4239 = vmatmul.mubr.msk.bf16.vlgmr.msra.gmra.mrb[8].mxu1 %vm2158_vm3, %v2154_v1  ;;  %4245 = vmatmul.mubr.msk.bf16.vlgmr.msra.gmra.mrb[20].mxu0 %vm2158_vm3, %v2155_v4 }
 0x301   : > { %4249 = vmatpush3.bf16.xpose.msra.mxu1 %v2439_v5  ;;  %4255 = vmatpush3.bf16.xpose.msra.mxu0 %v2485_v6 }
 0x302   : > { %4250 = vmatprep.mubr.msk.bf16.mxu1 %vm4575_vm1, %v4574_v32  ;;  %4256 = vmatprep.mubr.msk.bf16.mxu0 %vm4575_vm1, %v4574_v32 }
 0x303   : > { %4260 = vmatprep.subr.bf16.mxu1 %v4574_v32  ;;  %4266 = vmatprep.subr.bf16.mxu0 %v4574_v32 }
 0x308   : > { %4251 = vmatmul.mubr.msk.bf16.vlgmr.msra.gmra.mrb[12].mxu1 %vm2158_vm3, %v2156_v10  ;;  %4257 = vmatmul.mubr.msk.bf16.vlgmr.msra.gmra.mrb[24].mxu0 %vm2158_vm3, %v2157_v11 }
 0x309   : > { %4262 = vmatprep.mubr.msk.bf16.mxu1 %vm4575_vm1, %v4574_v32  ;;  %4268 = vmatprep.mubr.msk.bf16.mxu0 %vm4575_vm1, %v4574_v32 }
 0x3c3   : > { %v2199_v13 = vpop.f32.mrb[0].mxu1  ;;  %v2245_v15 = vpop.f32.mrb[12].mxu0 }
 0x3c4   : > { %v2539_v16 = vadd.f32 %v4073_v12, %v2199_v13  ;;  %v2540_v17 = vadd.f32 %v4073_v12, %v2245_v15  ;;  %v4216_v18 = vpop.f32.mrb[1].mxu1  ;;  %v4222_v19 = vpop.f32.mrb[13].mxu0 }
 0x3c5   : > { %v2202_v20 = vpop.f32.mrb[2].mxu1  ;;  %v2248_v21 = vpop.f32.mrb[14].mxu0 }
 0x3c6   : > { %v4217_v22 = vpop.f32.mrb[3].mxu1  ;;  %v4223_v23 = vpop.f32.mrb[15].mxu0  ;;  %v2547_v24 = vsel %vm2158_vm3, %v2539_v16, -inf  ;;  %v2550_v59 = vsel %vm2158_vm3, %v2540_v17, -inf }
 0x3c7   : > { %2548 = vmax.xlane.f32.xlu0 %v2547_v24  ;;  %2551 = vmax.xlane.f32.xlu1 %v2550_v59 }
 0x3cb   : > { %v2291_v25 = vpop.f32.mrb[4].mxu1  ;;  %v2337_v27 = vpop.f32.mrb[16].mxu0 }
 0x3cc   : > { %v2541_v26 = vadd.f32 %v4073_v12, %v2291_v25  ;;  %v4228_v28 = vpop.f32.mrb[5].mxu1  ;;  %v4234_v29 = vpop.f32.mrb[17].mxu0  ;;  %v2542_v31 = vadd.f32 %v4073_v12, %v2337_v27 }
 0x3cd   : > { %v2294_v30 = vpop.f32.mrb[6].mxu1  ;;  %v2340_v33 = vpop.f32.mrb[18].mxu0 }
 0x3ce   : > { %v4229_v34 = vpop.f32.mrb[7].mxu1  ;;  %v2553_v35 = vsel %vm2158_vm3, %v2541_v26, -inf  ;;  %v4235_v36 = vpop.f32.mrb[19].mxu0  ;;  %v2556_v38 = vsel %vm2158_vm3, %v2542_v31, -inf }
 0x3cf   : > { %2554 = vmax.xlane.f32.xlu0 %v2553_v35 }
 0x3d3   : > { %v2383_v39 = vpop.f32.mrb[8].mxu1  ;;  %2557 = vmax.xlane.f32.xlu0 %v2556_v38  ;;  %v2429_v41 = vpop.f32.mrb[20].mxu0 }
 0x3d4   : > { %v2543_v40 = vadd.f32 %v4074_v37, %v2383_v39  ;;  %v4240_v42 = vpop.f32.mrb[9].mxu1  ;;  %v5029_v43 = vadd.f32 %v4074_v37, %v2429_v41  ;;  %v4246_v44 = vpop.f32.mrb[21].mxu0 }
 0x3d5   : > { %v2386_v45 = vpop.f32.mrb[10].mxu1  ;;  %v2432_v46 = vpop.f32.mrb[22].mxu0 }
 0x3d6   : > { %v4241_v47 = vpop.f32.mrb[11].mxu1  ;;  %v2559_v48 = vsel %vm2158_vm3, %v2543_v40, -inf  ;;  %v4247_v49 = vpop.f32.mrb[23].mxu0  ;;  %v2562_v50 = vsel %vm2158_vm3, %v5029_v43, -inf }
 0x3d7   : > { %2560 = vmax.xlane.f32.xlu1 %v2559_v48  ;;  %2563 = vmax.xlane.f32.xlu0 %v2562_v50 }
 0x3db   : > { %v2475_v52 = vpop.f32.mrb[12].mxu1  ;;  %v2521_v54 = vpop.f32.mrb[24].mxu0 }
 0x3dc   : > { %v5034_v53 = vadd.f32 %v4074_v37, %v2475_v52  ;;  %v4252_v56 = vpop.f32.mrb[13].mxu1  ;;  %v5036_v57 = vadd.f32 %v4074_v37, %v2521_v54  ;;  %v4258_v55 = vpop.f32.mrb[25].mxu0 }
 0x3dd   : > { %v2478_v58 = vpop.f32.mrb[14].mxu1  ;;  %v2524_v62 = vpop.f32.mrb[26].mxu0 }
 0x3de   : > { %v4253_v60 = vpop.f32.mrb[15].mxu1  ;;  %v2565_v63 = vsel %vm2158_vm3, %v5034_v53, -inf  ;;  %v4259_v0 = vpop.f32.mrb[27].mxu0  ;;  %v2568_v1 = vsel %vm2158_vm3, %v5036_v57, -inf }
 0x3df   : > { %2566 = vmax.xlane.f32.xlu1 %v2565_v63  ;;  %2569 = vmax.xlane.f32.xlu0 %v2568_v1 }
 0x3f0   : > { %1506 = vrot.lane.b32.xlu1 %v4893_v61, %s4577_s26 }
 0x3f5   : > { %1500 = vrot.lane.b32.xlu0 %v4893_v61, %s4578_s6 }
 0x454   : > { %v2549_v3 = vpop.xlane.xlu0 %2548  ;;  %v2552_v4 = vpop.xlane.xlu1 %2551 }
 0x455   : > { %v2571_v5 = vsub.f32 %v2539_v16, %v2549_v3  ;;  %v2572_v6 = vsub.f32 %v2540_v17, %v2552_v4 }
 0x457   : > { %v2579_v7 = vmul.f32 1.442695, %v2571_v5  ;;  %v2581_v9 = vmul.f32 1.442695, %v2572_v6 }
 0x459   : > { %4440 = vpow2.f32 %v2579_v7 }
 0x45a   : > { %4442 = vpow2.f32 %v2581_v9 }
 0x45c   : > { %v2555_v10 = vpop.xlane.xlu0 %2554 }
 0x45d   : > { %v2573_v11 = vsub.f32 %v2541_v26, %v2555_v10 }
 0x45f   : > { %v2583_v12 = vmul.f32 1.442695, %v2573_v11 }
 0x460   : > { %v2558_v13 = vpop.xlane.xlu0 %2557 }
 0x461   : > { %4444 = vpow2.f32 %v2583_v12  ;;  %v2574_v15 = vsub.f32 %v2542_v31, %v2558_v13 }
 0x463   : > { %v5046_v18 = vpop.eup %4440  ;;  %v2585_v19 = vmul.f32 1.442695, %v2574_v15 }
 0x464   : > { %v5048_v20 = vpop.eup %4442  ;;  %v2561_v21 = vpop.xlane.xlu1 %2560  ;;  %v2595_v16 = vsel %vm2158_vm3, %v5046_v18, 0.0 }
 0x465   : > { %4446 = vpow2.f32 %v2585_v19  ;;  %v2575_v17 = vsub.f32 %v2543_v40, %v2561_v21  ;;  %2596 = vadd.xlane.f32.xlu1 %v2595_v16  ;;  %v2598_v22 = vsel %vm2158_vm3, %v5048_v20, 0.0  ;;  %v2564_v24 = vpop.xlane.xlu0 %2563 }
 0x466   : > { %2599 = vadd.xlane.f32.xlu0 %v2598_v22  ;;  %v2576_v16 = vsub.f32 %v5029_v43, %v2564_v24 }
 0x467   : > { %v2587_v23 = vmul.f32 1.442695, %v2575_v17 }
 0x468   : > { %v2589_v17 = vmul.f32 1.442695, %v2576_v16 }
 0x469   : > { %4448 = vpow2.f32 %v2587_v23 }
 0x46a   : > { %4450 = vpow2.f32 %v2589_v17 }
 0x46b   : > { %v5054_v59 = vpop.eup %4444 }
 0x46c   : > { %v5056_v25 = vpop.xlane.xlu1 %2566  ;;  %v2601_v26 = vsel %vm2158_vm3, %v5054_v59, 0.0  ;;  %v5060_v27 = vpop.xlane.xlu0 %2569 }
 0x46d   : > { %2602 = vadd.xlane.f32.xlu1 %v2601_v26  ;;  %v2577_v22 = vsub.f32 %v5034_v53, %v5056_v25  ;;  %v2578_v43 = vsub.f32 %v5036_v57, %v5060_v27 }
 0x46f   : > { %v5062_v28 = vpop.eup %4446  ;;  %v2591_v23 = vmul.f32 1.442695, %v2577_v22  ;;  %v2593_v53 = vmul.f32 1.442695, %v2578_v43 }
 0x470   : > { %v1507_v29 = vpop.permute.xlu1 %1506  ;;  %v2604_v30 = vsel %vm2158_vm3, %v5062_v28, 0.0  ;;  %v1501_v34 = vpop.permute.xlu0 %1500 }
 0x471   : > { %v1528_v31 = vcombine.low %v1495_v2, %v1507_v29  ;;  %v1529_v33 = vcombine.high %v1495_v2, %v1507_v29  ;;  %2605 = vadd.xlane.f32.xlu0 %v2604_v30  ;;  %v1512_v35 = vcombine.low %v4893_v61, %v1501_v34  ;;  %v1513_v36 = vcombine.high %v4893_v61, %v1501_v34 }
 0x472   : > { %4452 = vpow2.f32 %v2591_v23 }
 0x473   : > { %v5068_v37 = vpop.eup %4448  ;;  %v1536_v38 = vrot.slane %v1528_v31, %v4897_v8  ;;  %v1543_v39 = vrot.slane %v1529_v33, %v4897_v8  ;;  %v1520_v40 = vrot.slane %v1512_v35, %v4897_v8  ;;  %v1527_v41 = vrot.slane %v1513_v36, %v4897_v8 }
 0x474   : > { %v2607_v42 = vsel %vm2158_vm3, %v5068_v37, 0.0  ;;  %v5099_v26 = vpop.eup %4450  ;;  %4454 = vpow2.f32 %v2593_v53 }
 0x475   : > { %2608 = vadd.xlane.f32.xlu0 %v2607_v42  ;;  %v1544_v44 = vcombine.low %v1520_v40, %v1536_v38  ;;  %v1545_v45 = vcombine.high %v1520_v40, %v1536_v38  ;;  %v1560_v46 = vcombine.low %v1527_v41, %v1543_v39  ;;  %v1561_v47 = vcombine.high %v1527_v41, %v1543_v39 }
 0x476   : > { %v2610_v29 = vsel %vm2158_vm3, %v5099_v26, 0.0 }
 0x477   : > { %v1552_v61 = vrot.slane %v1544_v44, %v4899_v14  ;;  %v1559_v48 = vrot.slane %v1545_v45, %v4899_v14  ;;  %v1568_v49 = vrot.slane %v1560_v46, %v4899_v14  ;;  %v1575_v50 = vrot.slane %v1561_v47, %v4899_v14 }
 0x479   : > { %v1648_v52 = vcombine.low %v1552_v61, %v1559_v48  ;;  %v4053_v54 = vcombine.high %v1552_v61, %v1559_v48  ;;  %v1664_v56 = vcombine.low %v1568_v49, %v1575_v50  ;;  %v4054_v55 = vcombine.high %v1568_v49, %v1575_v50 }
 0x47b   : > { %v1655_v58 = vrot.slane %v1648_v52, %v4897_v8  ;;  %v1663_v62 = vrot.slane %v4053_v54, %v4897_v8  ;;  %v1671_v60 = vrot.slane %v1664_v56, %v4897_v8  ;;  %v1679_v63 = vrot.slane %v4054_v55, %v4897_v8 }
 0x47c   : > { %v5103_v30 = vpop.eup %4452 }
 0x47d   : > { %v1680_v0 = vcombine.low %v1655_v58, %v1663_v62  ;;  %v1696_v1 = vcombine.low %v1671_v60, %v1679_v63  ;;  %v1681_v2 = vcombine.high %v1655_v58, %v1663_v62  ;;  %v1697_v3 = vcombine.high %v1671_v60, %v1679_v63 }
 0x47e   : > { %1502 = vrot.lane.b32.xlu1 %v4862_v51, %s4578_s6  ;;  %v2613_v31 = vsel %vm2158_vm3, %v5103_v30, 0.0  ;;  %v5111_v24 = vpop.eup %4454  ;;  %s5447_s6 = sld [smem:[#allocation8_spill]] }
 0x47f   : > { %v1688_v4 = vrot.slane %v1680_v0, %v4899_v14  ;;  %v1704_v5 = vrot.slane %v1696_v1, %v4899_v14  ;;  %v1695_v6 = vrot.slane %v1681_v2, %v4899_v14  ;;  %v1711_v7 = vrot.slane %v1697_v3, %v4899_v14 }
 0x480   : > { %v2616_v25 = vsel %vm2158_vm3, %v5111_v24, 0.0 }
 0x481   : > { %v1712_v9 = vcombine.low %v1688_v4, %v1704_v5  ;;  %v1713_v10 = vcombine.high %v1688_v4, %v1704_v5  ;;  %v1714_v11 = vcombine.low %v1695_v6, %v1711_v7  ;;  %v1715_v12 = vcombine.high %v1695_v6, %v1711_v7 }
 0x483   : > { %v1784_v13 = vpack.c.bf16 %v1712_v9, %v1712_v9  ;;  %v1785_v15 = vpack.c.bf16 %v1713_v10, %v1713_v10  ;;  %v1786_v57 = vpack.c.bf16 %v1714_v11, %v1714_v11  ;;  %v1787_v41 = vpack.c.bf16 %v1715_v12, %v1715_v12 }
 0x484   : > { %p4108_p6 = scmp.ne.s32.totalorder %s5447_s6, 1 }
 0x485   : > { %v2648_v19 = vsel %vm2646_vm4, %v1784_v13, 0  ;;  %v2694_v21 = vsel %vm2646_vm4, %v1785_v15, 0  ;;  %v2740_v45 = vsel %vm2646_vm4, %v1786_v57, 0  ;;  %v2786_v46 = vsel %vm2646_vm4, %v1787_v41, 0  ;;  %s5449_s10 = sld [smem:[#allocation25_spill]] (!%p4108_p6) }
 0x486   : > { %4261 = vmatpush3.bf16.msra.mxu1 %v2648_v19  ;;  %4267 = vmatpush3.bf16.msra.mxu0 %v2694_v21  ;;  %vm4585_vm7 = vmmov (!%p4108_p6), 0   ;;  %vm3694_vm8 = vcmask (!%p4108_p6), 1041409   ;;  %vm3753_vm9 = vcmask (!%p4108_p6), 254976  }
 0x487   : > { %4272 = vmatprep.subr.bf16.mxu1 %v4574_v32  ;;  %4278 = vmatprep.subr.bf16.mxu0 %v4574_v32 }
 0x48b   : > { %1496 = vrot.lane.b32.xlu0 %v4862_v51, %s4576_s0  ;;  %s4582_s0 = smov 8  }
 0x4a2   : > { %2611 = vadd.xlane.f32.xlu1 %v2610_v29 }
 0x4aa   : > { %2614 = vadd.xlane.f32.xlu0 %v2613_v31 }
 0x4b3   : > { %1508 = vrot.lane.b32.xlu1 %v4862_v51, %s4577_s26  ;;  %s4583_s26 = smov 24  }
 0x4d7   : > { %2617 = vadd.xlane.f32.xlu1 %v2616_v25 }
 0x4f2   : > { %v2597_v33 = vpop.xlane.xlu1 %2596 }
 0x4f3   : > { %4456 = vrcp.f32 %v2597_v33  ;;  %v2600_v34 = vpop.xlane.xlu0 %2599 }
 0x4f4   : > { %4458 = vrcp.f32 %v2600_v34 }
 0x4fa   : > { %v2603_v35 = vpop.xlane.xlu1 %2602 }
 0x4fb   : > { %4460 = vrcp.f32 %v2603_v35 }
 0x4fd   : > { %v4457_v36 = vpop.eup %4456 }
 0x4fe   : > { %v4459_v38 = vpop.eup %4458  ;;  %v2627_v39 = vmul.f32 %v4457_v36, %v5046_v18  ;;  %v2606_v40 = vpop.xlane.xlu0 %2605 }
 0x4ff   : > { %v2628_v27 = vmul.f32 %v4459_v38, %v5048_v20  ;;  %4462 = vrcp.f32 %v2606_v40  ;;  %v1503_v50 = vpop.permute.xlu1 %1502 }
 0x500   : > { %v2635_v42 = vpack.c.bf16 %v2627_v39, %v2627_v39  ;;  %v1580_v54 = vcombine.low %v4862_v51, %v1503_v50  ;;  %v1581_v56 = vcombine.high %v4862_v51, %v1503_v50 }
 0x501   : > { %v2636_v44 = vpack.c.bf16 %v2628_v27, %v2628_v27 }
 0x502   : > { %4263 = vmatmul.mubr.msk.bf16.vlgmr.msra.gmra.mrb[16].mxu1 %vm2158_vm3, %v2635_v42  ;;  %v2609_v52 = vpop.xlane.xlu0 %2608  ;;  %v1588_v60 = vrot.slane %v1580_v54, %v4897_v8  ;;  %v1595_v63 = vrot.slane %v1581_v56, %v4897_v8 }
 0x503   : > { %4269 = vmatmul.mubr.msk.bf16.vlgmr.msra.gmra.mrb[28].mxu0 %vm2158_vm3, %v2636_v44  ;;  %4273 = vmatpush3.bf16.msra.mxu1 %v2740_v45  ;;  %4464 = vrcp.f32 %v2609_v52 }
 0x504   : > { %4279 = vmatpush3.bf16.msra.mxu0 %v2786_v46  ;;  %4274 = vmatprep.mubr.msk.bf16.mxu1 %vm4575_vm1, %v4574_v32 }
 0x505   : > { %v4461_v18 = vpop.eup %4460  ;;  %4280 = vmatprep.mubr.msk.bf16.mxu0 %vm4575_vm1, %v4574_v32  ;;  %4284 = vmatprep.subr.bf16.mxu1 %v4574_v32 }
 0x506   : > { %v2629_v20 = vmul.f32 %v4461_v18, %v5054_v59  ;;  %4290 = vmatprep.subr.bf16.mxu0 %v4574_v32  ;;  %v1497_v55 = vpop.permute.xlu0 %1496 }
 0x508   : > { %v2637_v47 = vpack.c.bf16 %v2629_v20, %v2629_v20 }
 0x509   : > { %v4463_v61 = vpop.eup %4462 }
 0x50a   : > { %v2630_v48 = vmul.f32 %v4463_v61, %v5062_v28  ;;  %4275 = vmatmul.mubr.msk.bf16.vlgmr.msra.gmra.mrb[20].mxu1 %vm2158_vm3, %v2637_v47 }
 0x50b   : > { %4286 = vmatprep.mubr.msk.bf16.mxu1 %vm4575_vm1, %v4574_v32 }
 0x50c   : > { %v2638_v49 = vpack.c.bf16 %v2630_v48, %v2630_v48 }
 0x50d   : > { %v4465_v43 = vpop.eup %4464 }
 0x50e   : > { %4281 = vmatmul.mubr.msk.bf16.vlgmr.msra.gmra.mrb[32].mxu0 %vm2158_vm3, %v2638_v49  ;;  %v2631_v57 = vmul.f32 %v4465_v43, %v5068_v37 }
 0x50f   : > { %4292 = vmatprep.mubr.msk.bf16.mxu0 %vm4575_vm1, %v4574_v32 }
 0x510   : > { %v2639_v20 = vpack.c.bf16 %v2631_v57, %v2631_v57 }
 0x52f   : > { %v2612_v59 = vpop.xlane.xlu1 %2611 }
 0x530   : > { %4466 = vrcp.f32 %v2612_v59 }
 0x533   : > { %v1509_v28 = vpop.permute.xlu1 %1508 }
 0x534   : > { %v1596_v58 = vcombine.low %v1497_v55, %v1509_v28  ;;  %v1597_v62 = vcombine.high %v1497_v55, %v1509_v28 }
 0x536   : > { %v1604_v0 = vrot.slane %v1596_v58, %v4897_v8  ;;  %v1611_v1 = vrot.slane %v1597_v62, %v4897_v8 }
 0x537   : > { %v2615_v17 = vpop.xlane.xlu0 %2614 }
 0x538   : > { %v1612_v2 = vcombine.low %v1588_v60, %v1604_v0  ;;  %v1613_v3 = vcombine.high %v1588_v60, %v1604_v0  ;;  %v1628_v4 = vcombine.low %v1595_v63, %v1611_v1  ;;  %v1629_v5 = vcombine.high %v1595_v63, %v1611_v1 }
 0x539   : > { %4468 = vrcp.f32 %v2615_v17 }
 0x53a   : > { %v1620_v51 = vrot.slane %v1612_v2, %v4899_v14  ;;  %v1627_v6 = vrot.slane %v1613_v3, %v4899_v14  ;;  %v1636_v7 = vrot.slane %v1628_v4, %v4899_v14  ;;  %v1643_v9 = vrot.slane %v1629_v5, %v4899_v14  ;;  %v4467_v35 = vpop.eup %4466 }
 0x53b   : > { %v2632_v27 = vmul.f32 %v4467_v35, %v5099_v26 }
 0x53c   : > { %v1716_v10 = vcombine.low %v1620_v51, %v1627_v6  ;;  %v4055_v11 = vcombine.high %v1620_v51, %v1627_v6  ;;  %v1732_v12 = vcombine.low %v1636_v7, %v1643_v9  ;;  %v4056_v13 = vcombine.high %v1636_v7, %v1643_v9 }
 0x53d   : > { %v2640_v47 = vpack.c.bf16 %v2632_v27, %v2632_v27 }
 0x53e   : > { %v1723_v15 = vrot.slane %v1716_v10, %v4897_v8  ;;  %v1731_v19 = vrot.slane %v4055_v11, %v4897_v8  ;;  %v1739_v21 = vrot.slane %v1732_v12, %v4897_v8  ;;  %v1747_v16 = vrot.slane %v4056_v13, %v4897_v8 }
 0x540   : > { %v1748_v22 = vcombine.low %v1723_v15, %v1731_v19  ;;  %v1764_v23 = vcombine.low %v1739_v21, %v1747_v16  ;;  %v1749_v29 = vcombine.high %v1723_v15, %v1731_v19  ;;  %v1765_v31 = vcombine.high %v1739_v21, %v1747_v16 }
 0x542   : > { %v1756_v53 = vrot.slane %v1748_v22, %v4899_v14  ;;  %v1772_v25 = vrot.slane %v1764_v23, %v4899_v14  ;;  %v1763_v33 = vrot.slane %v1749_v29, %v4899_v14  ;;  %v1779_v34 = vrot.slane %v1765_v31, %v4899_v14 }
 0x543   : > { %v4469_v61 = vpop.eup %4468 }
 0x544   : > { %v1780_v36 = vcombine.low %v1756_v53, %v1772_v25  ;;  %v1781_v38 = vcombine.high %v1756_v53, %v1772_v25  ;;  %v1782_v39 = vcombine.low %v1763_v33, %v1779_v34  ;;  %v1783_v40 = vcombine.high %v1763_v33, %v1779_v34 }
 0x545   : > { %v2633_v48 = vmul.f32 %v4469_v61, %v5103_v30 }
 0x546   : > { %v1788_v41 = vpack.c.bf16 %v1780_v36, %v1780_v36  ;;  %v1789_v42 = vpack.c.bf16 %v1781_v38, %v1781_v38  ;;  %v1790_v46 = vpack.c.bf16 %v1782_v39, %v1782_v39  ;;  %v1791_v18 = vpack.c.bf16 %v1783_v40, %v1783_v40 }
 0x547   : > { %v2641_v49 = vpack.c.bf16 %v2633_v48, %v2633_v48 }
 0x548   : > { %v2832_v44 = vsel %vm2646_vm4, %v1788_v41, 0  ;;  %v2878_v45 = vsel %vm2646_vm4, %v1789_v42, 0  ;;  %v2924_v37 = vsel %vm2646_vm4, %v1790_v46, 0  ;;  %v2970_v26 = vsel %vm2646_vm4, %v1791_v18, 0 }
 0x549   : > { %4285 = vmatpush3.bf16.msra.mxu1 %v2832_v44  ;;  %4291 = vmatpush3.bf16.msra.mxu0 %v2878_v45 }
 0x54a   : > { %4296 = vmatprep.subr.bf16.mxu1 %v4574_v32  ;;  %4302 = vmatprep.subr.bf16.mxu0 %v4574_v32 }
 0x54c   : > { %4287 = vmatmul.mubr.msk.bf16.vlgmr.msra.gmra.mrb[24].mxu1 %vm2158_vm3, %v2639_v20  ;;  %4293 = vmatmul.mubr.msk.bf16.vlgmr.msra.gmra.mrb[36].mxu0 %vm2158_vm3, %v2640_v47 }
 0x54d   : > { %4297 = vmatpush3.bf16.msra.mxu1 %v2924_v37  ;;  %4303 = vmatpush3.bf16.msra.mxu0 %v2970_v26 }
 0x54e   : > { %4298 = vmatprep.mubr.msk.bf16.mxu1 %vm4575_vm1, %v4574_v32  ;;  %4304 = vmatprep.mubr.msk.bf16.mxu0 %vm4575_vm1, %v4574_v32 }
 0x54f   : > { %4308 = vmatprep.subr.bf16.mxu1 %v4574_v32  ;;  %4316 = vmatprep.subr.bf16.mxu0 %v4574_v32 }
 0x554   : > { %4299 = vmatmul.mubr.msk.bf16.vlgmr.msra.gmra.mrb[28].mxu1 %vm2158_vm3, %v2641_v49 }
 0x555   : > { %4312 = vmatprep.mubr.msk.bf16.mxu1 %vm4575_vm1, %v4574_v32 }
 0x564   : > { %v2618_v50 = vpop.xlane.xlu1 %2617 }
 0x565   : > { %4470 = vrcp.f32 %v2618_v50 }
 0x56f   : > { %v4471_v52 = vpop.eup %4470 }
 0x570   : > { %v2634_v30 = vmul.f32 %v4471_v52, %v5111_v24 }
 0x572   : > { %v2642_v59 = vpack.c.bf16 %v2634_v30, %v2634_v30 }
 0x574   : > { %4305 = vmatmul.mubr.msk.bf16.vlgmr.msra.gmra.mrb[40].mxu0 %vm2158_vm3, %v2642_v59 }
 0x575   : > { %4320 = vmatprep.mubr.msk.bf16.mxu0 %vm4575_vm1, %v4574_v32 }
 0x5d5   : > { %v2684_v54 = vpop.f32.mrb[16].mxu1 }
 0x5d6   : > { %v2730_v56 = vpop.f32.mrb[28].mxu0  ;;  %v4264_v55 = vpop.f32.mrb[17].mxu1 }
 0x5d7   : > { %v4270_v28 = vpop.f32.mrb[29].mxu0  ;;  %v2687_v58 = vpop.f32.mrb[18].mxu1 }
 0x5d8   : > { %v2733_v62 = vpop.f32.mrb[30].mxu0  ;;  %v4265_v60 = vpop.f32.mrb[19].mxu1 }
 0x5d9   : > { %v4271_v63 = vpop.f32.mrb[31].mxu0 }
 0x5dd   : > { %v2776_v0 = vpop.f32.mrb[20].mxu1 }
 0x5de   : > { %v3012_v1 = vcombine.low %v2684_v54, %v2776_v0  ;;  %v3013_v2 = vcombine.high %v2684_v54, %v2776_v0  ;;  %v4276_v3 = vpop.f32.mrb[21].mxu1 }
 0x5df   : > { %v2779_v4 = vpop.f32.mrb[22].mxu1 }
 0x5e0   : > { %v4277_v24 = vpop.f32.mrb[23].mxu1  ;;  %v3020_v10 = vrot.slane %v3012_v1, %v4897_v8  ;;  %v3027_v11 = vrot.slane %v3013_v2, %v4897_v8 }
 0x5e1   : > { %v2822_v5 = vpop.f32.mrb[32].mxu0 }
 0x5e2   : > { %v3028_v51 = vcombine.low %v2730_v56, %v2822_v5  ;;  %v3029_v6 = vcombine.high %v2730_v56, %v2822_v5  ;;  %v4282_v7 = vpop.f32.mrb[33].mxu0 }
 0x5e3   : > { %v2825_v9 = vpop.f32.mrb[34].mxu0 }
 0x5e4   : > { %v3036_v12 = vrot.slane %v3028_v51, %v4897_v8  ;;  %v3043_v13 = vrot.slane %v3029_v6, %v4897_v8  ;;  %v4283_v15 = vpop.f32.mrb[35].mxu0 }
 0x5e6   : > { %v3044_v19 = vcombine.low %v3020_v10, %v3036_v12  ;;  %v3045_v21 = vcombine.high %v3020_v10, %v3036_v12  ;;  %v3060_v16 = vcombine.low %v3027_v11, %v3043_v13  ;;  %v3061_v17 = vcombine.high %v3027_v11, %v3043_v13 }
 0x5e8   : > { %v3052_v22 = vrot.slane %v3044_v19, %v4899_v14  ;;  %v3059_v23 = vrot.slane %v3045_v21, %v4899_v14  ;;  %v3068_v29 = vrot.slane %v3060_v16, %v4899_v14  ;;  %v3075_v31 = vrot.slane %v3061_v17, %v4899_v14  ;;  %v4428_v17 = vld [vmem:[%s4765_s7] sm:$0xff]  }
 0x5e9   : > { %4309 = vmatpush3.bf16.msra.mxu1 %v4428_v17  ;;  %v4433_v17 = vld [vmem:[%s4792_s5 + $0x8] sm:$0xff]  }
 0x5ea   : > { %v3148_v43 = vcombine.low %v3052_v22, %v3059_v23  ;;  %v4083_v53 = vcombine.high %v3052_v22, %v3059_v23  ;;  %v3164_v25 = vcombine.low %v3068_v29, %v3075_v31  ;;  %v4084_v33 = vcombine.high %v3068_v29, %v3075_v31  ;;  %4310 = vmatprep.subr.bf16.mxu1 %v4574_v32 }
 0x5ec   : > { %v3155_v34 = vrot.slane %v3148_v43, %v4897_v8  ;;  %v3163_v35 = vrot.slane %v4083_v53, %v4897_v8  ;;  %v3171_v36 = vrot.slane %v3164_v25, %v4897_v8  ;;  %v3179_v38 = vrot.slane %v4084_v33, %v4897_v8 }
 0x5ee   : > { %v3181_v39 = vcombine.high %v3155_v34, %v3163_v35  ;;  %v3197_v40 = vcombine.high %v3171_v36, %v3179_v38  ;;  %v3180_v57 = vcombine.low %v3155_v34, %v3163_v35  ;;  %v3196_v27 = vcombine.low %v3171_v36, %v3179_v38 }
 0x5f0   : > { %v5190_v41 = vrot.slane %v3181_v39, %v4899_v14  ;;  %v5193_v42 = vrot.slane %v3197_v40, %v4899_v14  ;;  %v5196_v44 = vrot.slane %v3180_v57, %v4899_v14  ;;  %v5199_v45 = vrot.slane %v3196_v27, %v4899_v14  ;;  %v4429_v39 = vld [vmem:[%s4765_s7 + $0x8] sm:$0xff]  }
 0x5f1   : > { %4311 = vmatpush3.bf16.msra.mxu1 %v4429_v39  ;;  %v4092_v39 = vld [vmem:[%s5444_s28] ss:$0 sm:$0xff] }
 0x5f2   : > { %v3214_v46 = vcombine.low %v5190_v41, %v5193_v42  ;;  %v3212_v18 = vcombine.low %v5196_v44, %v5199_v45  ;;  %v3213_v20 = vcombine.high %v5196_v44, %v5199_v45  ;;  %v3215_v47 = vcombine.high %v5190_v41, %v5193_v42  ;;  %4324 = vmatprep.subr.bf16.mxu1 %v4574_v32  ;;  %v4087_v44 = vld [vmem:[%s5442_s29] ss:$0 sm:$0xff] }
 0x61f   : > { %v2868_v61 = vpop.f32.mrb[24].mxu1  ;;  %v2914_v37 = vpop.f32.mrb[36].mxu0 }
 0x620   : > { %v4288_v26 = vpop.f32.mrb[25].mxu1  ;;  %v4294_v48 = vpop.f32.mrb[37].mxu0 }
 0x621   : > { %v2871_v49 = vpop.f32.mrb[26].mxu1  ;;  %v2917_v50 = vpop.f32.mrb[38].mxu0 }
 0x622   : > { %v4289_v52 = vpop.f32.mrb[27].mxu1  ;;  %v4295_v30 = vpop.f32.mrb[39].mxu0 }
 0x627   : > { %v2960_v59 = vpop.f32.mrb[28].mxu1 }
 0x628   : > { %v3080_v54 = vcombine.low %v2868_v61, %v2960_v59  ;;  %v3081_v56 = vcombine.high %v2868_v61, %v2960_v59  ;;  %v4300_v55 = vpop.f32.mrb[29].mxu1 }
 0x629   : > { %v2963_v28 = vpop.f32.mrb[30].mxu1 }
 0x62a   : > { %v4301_v58 = vpop.f32.mrb[31].mxu1  ;;  %v3088_v2 = vrot.slane %v3080_v54, %v4897_v8  ;;  %v3095_v3 = vrot.slane %v3081_v56, %v4897_v8 }
 0x647   : > { %v3006_v62 = vpop.f32.mrb[40].mxu0 }
 0x648   : > { %v3096_v60 = vcombine.low %v2914_v37, %v3006_v62  ;;  %v3097_v63 = vcombine.high %v2914_v37, %v3006_v62  ;;  %v4306_v0 = vpop.f32.mrb[41].mxu0 }
 0x649   : > { %v3009_v1 = vpop.f32.mrb[42].mxu0  ;;  %v4484_v0 = vld [vmem:[#allocation2] sm:$0xff] }
 0x64a   : > { %v3104_v4 = vrot.slane %v3096_v60, %v4897_v8  ;;  %v3111_v24 = vrot.slane %v3097_v63, %v4897_v8  ;;  %v4307_v5 = vpop.f32.mrb[43].mxu0 }
 0x64c   : > { %v3112_v51 = vcombine.low %v3088_v2, %v3104_v4  ;;  %v3113_v6 = vcombine.high %v3088_v2, %v3104_v4  ;;  %v3128_v7 = vcombine.low %v3095_v3, %v3111_v24  ;;  %v3129_v9 = vcombine.high %v3095_v3, %v3111_v24  ;;  %v4485_v3 = vld [vmem:[#allocation2 + $0x8] sm:$0xff] }
 0x64e   : > { %v3120_v10 = vrot.slane %v3112_v51, %v4899_v14  ;;  %v3127_v11 = vrot.slane %v3113_v6, %v4899_v14  ;;  %v3136_v12 = vrot.slane %v3128_v7, %v4899_v14  ;;  %v3143_v13 = vrot.slane %v3129_v9, %v4899_v14 }
 0x650   : > { %v3216_v15 = vcombine.low %v3120_v10, %v3127_v11  ;;  %v4085_v19 = vcombine.high %v3120_v10, %v3127_v11  ;;  %v3232_v21 = vcombine.low %v3136_v12, %v3143_v13  ;;  %v4086_v16 = vcombine.high %v3136_v12, %v3143_v13 }
 0x652   : > { %v3223_v22 = vrot.slane %v3216_v15, %v4897_v8  ;;  %v3231_v23 = vrot.slane %v4085_v19, %v4897_v8  ;;  %v3239_v29 = vrot.slane %v3232_v21, %v4897_v8  ;;  %v3247_v31 = vrot.slane %v4086_v16, %v4897_v8  ;;  %v4430_v19 = vld [vmem:[%s4782_s27] sm:$0xff]   ;;  %v4431_v21 = vld [vmem:[%s4782_s27 + $0x8] sm:$0xff]   ;;  %s5448_s27 = sld [smem:[#allocation24_spill]] (!%p4108_p6) }
 0x653   : > { %4317 = vmatpush3.bf16.msra.mxu0 %v4430_v19  ;;  %v4432_v16 = vld [vmem:[%s4792_s5] sm:$0xff]  }
 0x654   : > { %v3249_v43 = vcombine.high %v3223_v22, %v3231_v23  ;;  %v3265_v53 = vcombine.high %v3239_v29, %v3247_v31  ;;  %v3248_v25 = vcombine.low %v3223_v22, %v3231_v23  ;;  %v3264_v33 = vcombine.low %v3239_v29, %v3247_v31  ;;  %4318 = vmatprep.subr.bf16.mxu0 %v4574_v32 }
 0x656   : > { %v3263_v34 = vrot.slane %v3249_v43, %v4899_v14  ;;  %v3279_v35 = vrot.slane %v3265_v53, %v4899_v14  ;;  %v3256_v36 = vrot.slane %v3248_v25, %v4899_v14  ;;  %v3272_v38 = vrot.slane %v3264_v33, %v4899_v14  ;;  %v4091_v33 = vld [vmem:[%s5443_s30] ss:$0 sm:$0xff] }
 0x657   : > { %4319 = vmatpush3.bf16.msra.mxu0 %v4431_v21 }
 0x658   : > { %v3282_v40 = vcombine.low %v3263_v34, %v3279_v35  ;;  %v3281_v57 = vcombine.high %v3256_v36, %v3272_v38  ;;  %v3280_v27 = vcombine.low %v3256_v36, %v3272_v38  ;;  %v3283_v8 = vcombine.high %v3263_v34, %v3279_v35 }
 0x65a   : > { %v4412_v41 = vpack.i.bf16 %v3282_v40, %v3214_v46  ;;  %v4407_v42 = vpack.i.bf16 %v3281_v57, %v3213_v20  ;;  %v4417_v61 = vpack.i.bf16 %v3283_v8, %v3215_v47 }
 0x65c   : > { %4413 = vrot.lane.b32.xlu1 %v4412_v41, %s4581_s4  ;;  %4408 = vrot.lane.b32.xlu0 %v4407_v42, %s4582_s0  ;;  %v4434_v41 = vld [vmem:[%s4792_s5 + $0x10] sm:$0xff]   ;;  %v4435_v42 = vld [vmem:[%s4792_s5 + $0x18] sm:$0xff]  }
 0x660   : > { %4418 = vrot.lane.b32.xlu0 %v4417_v61, %s4583_s26  ;;  %v4436_v61 = vld [vmem:[%s4792_s5 + $0x20] sm:$0xff]  }
 0x6ce   : > { %v4414_v37 = vpop.permute.xlu1 %4413  ;;  %v4409_v14 = vpop.permute.xlu0 %4408 }
 0x6cf   : > { %v4411_v26 = vunpack.i.h.bf16 %v4409_v14  ;;  %v4410_v48 = vunpack.i.l.bf16 %v4409_v14  ;;  %v4416_v49 = vunpack.i.h.bf16 %v4414_v37  ;;  %v4415_v50 = vunpack.i.l.bf16 %v4414_v37  ;;  %v4437_v37 = vld [vmem:[%s4792_s5 + $0x28] sm:$0xff]   ;;  %v4438_v14 = vld [vmem:[%s4792_s5 + $0x30] sm:$0xff]  }
 0x6d1   : > { %v3308_v46 = vsel %vm2158_vm3, %v3212_v18, %v4410_v48  ;;  %v3309_v20 = vsel %vm2158_vm3, %v3280_v27, %v4411_v26  ;;  %v4439_v26 = vld [vmem:[%s4792_s5 + $0x38] sm:$0xff]   ;;  %v4093_v48 = vld [vmem:[%s5445_s22] ss:$0 sm:$0xff] }
 0x6d2   : > { %v4419_v47 = vpop.permute.xlu0 %4418  ;;  %v3311_v59 = vsel %vm3310_vm5, %v3308_v46, %v4415_v50  ;;  %v3312_v54 = vsel %vm3310_vm5, %v3309_v20, %v4416_v49 }
 0x6d3   : > { %v4421_v52 = vunpack.i.h.bf16 %v4419_v47  ;;  %v4420_v30 = vunpack.i.l.bf16 %v4419_v47 }
 0x6d5   : > { %v3314_v56 = vsel %vm3313_vm6, %v3311_v59, %v4420_v30  ;;  %v3315_v55 = vsel %vm3313_vm6, %v3312_v54, %v4421_v52 }
 0x6d6   : > { %v3316_v28 = vpack.c.bf16 %v3315_v55, %v3314_v56 }
 0x6d8   : > { %4313 = vmatmul.mubr.msk.bf16.vlgmr.msra.gmra.mrb[32].mxu1 %vm1083_vm2, %v3316_v28 }
 0x6d9   : > { %4340 = vmatprep.mubr.msk.bf16.mxu1 %vm4575_vm1, %v4574_v32  ;;  %4325 = vmatpush3.bf16.msra.mxu1 %v4432_v16 }
 0x6da   : > { %4326 = vmatprep.subr.bf16.mxu1 %v4574_v32 }
 0x6dd   : > { %4327 = vmatpush3.bf16.msra.mxu1 %v4433_v17 }
 0x6de   : > { %4328 = vmatprep.subr.bf16.mxu1 %v4574_v32 }
 0x6e1   : > { %4329 = vmatpush3.bf16.msra.mxu1 %v4434_v41 }
 0x6e2   : > { %4330 = vmatprep.subr.bf16.mxu1 %v4574_v32 }
 0x6e5   : > { %4331 = vmatpush3.bf16.msra.mxu1 %v4435_v42 }
 0x6e6   : > { %4332 = vmatprep.subr.bf16.mxu1 %v4574_v32 }
 0x6e9   : > { %4333 = vmatpush3.bf16.msra.mxu1 %v4436_v61 }
 0x6ea   : > { %4334 = vmatprep.subr.bf16.mxu1 %v4574_v32 }
 0x6ed   : > { %4335 = vmatpush3.bf16.msra.mxu1 %v4437_v37 }
 0x6ee   : > { %4336 = vmatprep.subr.bf16.mxu1 %v4574_v32 }
 0x6f1   : > { %4337 = vmatpush3.bf16.msra.mxu1 %v4438_v14 }
 0x6f2   : > { %4338 = vmatprep.subr.bf16.mxu1 %v4574_v32 }
 0x6f5   : > { %4339 = vmatpush3.bf16.msra.mxu1 %v4439_v26 }
 0x7ab   : > { %v3377_v45 = vpop.f32.mrb[32].mxu1 }
 0x7ac   : > { %v3378_v18 = vadd.f32 %v4087_v44, %v3377_v45  ;;  %v4314_v58 = vpop.f32.mrb[33].mxu1 }
 0x7ad   : > { %v3380_v62 = vpop.f32.mrb[34].mxu1 }
 0x7ae   : > { %v3381_v60 = vadd.f32 %v4087_v44, %v3380_v62  ;;  %v4315_v63 = vpop.f32.mrb[35].mxu1  ;;  %v3384_v1 = vadd.f32 %v4484_v0, %v3378_v18  ;;  %v4097_v62 = vld [vmem:[%s992_s19] ss:$0 sm:$0xff] }
 0x7b0   : > { %v3388_v2 = vsel %vm1083_vm2, %v3384_v1, 0.0  ;;  %v3385_v4 = vadd.f32 %v4485_v3, %v3381_v60 }
 0x7b1   : > { %3389 = vadd.xlane.f32.xlu1 %v3388_v2 }
 0x7b2   : > { %v3391_v24 = vsel %vm1083_vm2, %v3385_v4, 0.0 }
 0x7b3   : > { %3392 = vadd.xlane.f32.xlu0 %v3391_v24 }
 0x83e   : > { %v3390_v5 = vpop.xlane.xlu1 %3389 }
 0x83f   : > { %v3395_v51 = vmul.f32 0.03125, %v3390_v5 }
 0x840   : > { %v3393_v6 = vpop.xlane.xlu0 %3392 }
 0x841   : > { %v3397_v7 = vsub.f32 %v3384_v1, %v3395_v51  ;;  %v3396_v9 = vmul.f32 0.03125, %v3393_v6 }
 0x843   : > { %v3398_v10 = vsub.f32 %v3385_v4, %v3396_v9  ;;  %v3399_v11 = vmul.f32 %v3397_v7, %v3397_v7 }
 0x845   : > { %v3401_v12 = vsel %vm1083_vm2, %v3399_v11, 0.0  ;;  %v3400_v13 = vmul.f32 %v3398_v10, %v3398_v10 }
 0x846   : > { %3402 = vadd.xlane.f32.xlu0 %v3401_v12 }
 0x847   : > { %v3404_v15 = vsel %vm1083_vm2, %v3400_v13, 0.0 }
 0x848   : > { %3405 = vadd.xlane.f32.xlu1 %v3404_v15 }
 0x8d3   : > { %v3403_v22 = vpop.xlane.xlu0 %3402 }
 0x8d4   : > { %v3407_v23 = vmul.f32 0.03125, %v3403_v22 }
 0x8d5   : > { %v3406_v29 = vpop.xlane.xlu1 %3405 }
 0x8d6   : > { %v3409_v31 = vadd.f32 1e-05, %v3407_v23  ;;  %v3408_v43 = vmul.f32 0.03125, %v3406_v29 }
 0x8d8   : > { %4472 = vrsqrt.f32 %v3409_v31  ;;  %v3410_v53 = vadd.f32 1e-05, %v3408_v43 }
 0x8da   : > { %4474 = vrsqrt.f32 %v3410_v53  ;;  %v4106_v53 = vld [vmem:[%s995_s8] ss:$0 sm:$0xff] }
 0x8e2   : > { %v4473_v25 = vpop.eup %4472 }
 0x8e3   : > { %v3413_v34 = vmul.f32 %v4473_v25, %v3397_v7 }
 0x8e4   : > { %v4475_v35 = vpop.eup %4474 }
 0x8e5   : > { %v3421_v36 = vmul.f32 %v4091_v33, %v3413_v34  ;;  %v3414_v38 = vmul.f32 %v4475_v35, %v3398_v10  ;;  %v4107_v34 = vld [vmem:[%s998_s14] ss:$0 sm:$0xff] }
 0x8e7   : > { %v3422_v40 = vmul.f32 %v4091_v33, %v3414_v38  ;;  %v3429_v57 = vadd.f32 %v4092_v39, %v3421_v36 }
 0x8e9   : > { %v3430_v27 = vadd.f32 %v4092_v39, %v3422_v40 }
 0x8eb   : > { %v3431_v8 = vpack.c.bf16 %v3430_v27, %v3429_v57 }
 0x8ed   : > { %4321 = vmatmul.mubr.msk.bf16.vlgmr.msra.gmra.mrb[44].mxu0 %vm1083_vm2, %v3431_v8  ;;  %v4487_v8 = vld [vmem:[%s5448_s27 + $0x8] sm:$0xff] (!%p4108_p6)  }
 0x9c0   : > { %v3492_v49 = vpop.f32.mrb[44].mxu0 }
 0x9c1   : > { %v3493_v50 = vadd.f32 %v4093_v48, %v3492_v49  ;;  %v4322_v46 = vpop.f32.mrb[45].mxu0 }
 0x9c2   : > { %v3495_v20 = vpop.f32.mrb[46].mxu0  ;;  %v4109_v46 = vld [vmem:[%s5449_s10] ss:$0 sm:$0xff] (!%p4108_p6) }
 0x9c3   : > { %v3501_v47 = vmul.f32 0.70710677, %v3493_v50  ;;  %v3496_v52 = vadd.f32 %v4093_v48, %v3495_v20  ;;  %v4323_v30 = vpop.f32.mrb[47].mxu0  ;;  %v3499_v55 = vmul.f32 0.5, %v3493_v50 }
 0x9c5   : > { %4476 = verf.f32 %v3501_v47  ;;  %v3502_v59 = vmul.f32 0.70710677, %v3496_v52  ;;  %v3500_v28 = vmul.f32 0.5, %v3496_v52 }
 0x9c7   : > { %4478 = verf.f32 %v3502_v59 }
 0x9cf   : > { %v4477_v54 = vpop.eup %4476 }
 0x9d0   : > { %v3505_v56 = vadd.f32 1.0, %v4477_v54 }
 0x9d1   : > { %v4479_v32 = vpop.eup %4478 }
 0x9d2   : > { %v3506_v44 = vadd.f32 1.0, %v4479_v32  ;;  %v3507_v45 = vmul.f32 %v3505_v56, %v3499_v55 }
 0x9d4   : > { %v3508_v18 = vmul.f32 %v3506_v44, %v3500_v28 }
 0x9d6   : > { %v3509_v58 = vpack.c.bf16 %v3508_v18, %v3507_v45 }
 0x9d8   : > { %4341 = vmatmul.mubr.bf16.vlgmr.msra.gmra.mrb[36].mxu1 %v3509_v58 }
 0xaab   : > { %v3615_v60 = vpop.f32.mrb[36].mxu1 }
 0xaac   : > { %v3616_v63 = vadd.f32 %v4097_v62, %v3615_v60  ;;  %v4342_v0 = vpop.f32.mrb[37].mxu1 }
 0xaad   : > { %v3618_v1 = vpop.f32.mrb[38].mxu1 }
 0xaae   : > { %v3619_v2 = vadd.f32 %v4097_v62, %v3618_v1  ;;  %v4343_v3 = vpop.f32.mrb[39].mxu1  ;;  %v3622_v4 = vadd.f32 %v3616_v63, %v3429_v57  ;;  %v4486_v57 = vld [vmem:[%s5448_s27] sm:$0xff] (!%p4108_p6)  }
 0xab0   : > { %v3626_v24 = vsel %vm1083_vm2, %v3622_v4, 0.0  ;;  %v3623_v5 = vadd.f32 %v3619_v2, %v3430_v27  ;;  %v4584_v27 = vmov (!%p4108_p6), 0.0  }
 0xab1   : > { %3627 = vadd.xlane.f32.xlu0 %v3626_v24  ;;  %4344 = vmatprep.subr.bf16.mxu0 (!%p4108_p6), %v4584_v27 }
 0xab2   : > { %v3629_v51 = vsel %vm1083_vm2, %v3623_v5, 0.0  ;;  %4345 = vmatpush3.bf16.msra.mxu0 (!%p4108_p6), %v4486_v57  ;;  %4348 = vmatprep.mubr.msk.bf16.mxu0 (!%p4108_p6), %vm4585_vm7, %v4584_v27 }
 0xab3   : > { %3630 = vadd.xlane.f32.xlu1 %v3629_v51  ;;  %4346 = vmatprep.subr.bf16.mxu0 (!%p4108_p6), %v4584_v27 }
 0xab6   : > { %4347 = vmatpush3.bf16.msra.mxu0 (!%p4108_p6), %v4487_v8 }
 0xb3e   : > { %v3628_v6 = vpop.xlane.xlu0 %3627 }
 0xb3f   : > { %v3632_v7 = vmul.f32 0.03125, %v3628_v6 }
 0xb40   : > { %v3631_v9 = vpop.xlane.xlu1 %3630 }
 0xb41   : > { %v3634_v10 = vsub.f32 %v3622_v4, %v3632_v7  ;;  %v3633_v11 = vmul.f32 0.03125, %v3631_v9 }
 0xb43   : > { %v3635_v12 = vsub.f32 %v3623_v5, %v3633_v11  ;;  %v3636_v13 = vmul.f32 %v3634_v10, %v3634_v10 }
 0xb45   : > { %v3638_v15 = vsel %vm1083_vm2, %v3636_v13, 0.0  ;;  %v3637_v19 = vmul.f32 %v3635_v12, %v3635_v12 }
 0xb46   : > { %3639 = vadd.xlane.f32.xlu0 %v3638_v15 }
 0xb47   : > { %v3641_v21 = vsel %vm1083_vm2, %v3637_v19, 0.0 }
 0xb48   : > { %3642 = vadd.xlane.f32.xlu1 %v3641_v21 }
 0xbd3   : > { %v3640_v16 = vpop.xlane.xlu0 %3639 }
 0xbd4   : > { %v3644_v17 = vmul.f32 0.03125, %v3640_v16 }
 0xbd5   : > { %v3643_v22 = vpop.xlane.xlu1 %3642 }
 0xbd6   : > { %v3646_v23 = vadd.f32 1e-05, %v3644_v17  ;;  %v3645_v29 = vmul.f32 0.03125, %v3643_v22 }
 0xbd8   : > { %4480 = vrsqrt.f32 %v3646_v23  ;;  %v3647_v31 = vadd.f32 1e-05, %v3645_v29 }
 0xbda   : > { %4482 = vrsqrt.f32 %v3647_v31 }
 0xbe2   : > { %v4481_v43 = vpop.eup %4480 }
 0xbe3   : > { %v3650_v25 = vmul.f32 %v4481_v43, %v3634_v10 }
 0xbe4   : > { %v4483_v33 = vpop.eup %4482 }
 0xbe5   : > { %v3658_v35 = vmul.f32 %v4106_v53, %v3650_v25  ;;  %v3651_v36 = vmul.f32 %v4483_v33, %v3635_v12  ;;  %3673 = sbr.rel (%p4108_p6) target bundleno = 3294 (0xcde), region = 116 }
 0xbe7   : > { %v3666_v38 = vadd.f32 %v4107_v34, %v3658_v35  ;;  %v3659_v39 = vmul.f32 %v4106_v53, %v3651_v36 }
 0xbe9   : > { %3668 = vst.msk [vmem:[#allocation2] sm:$0xff] %vm1083_vm2, %v3666_v38  ;;  %v3667_v40 = vadd.f32 %v4107_v34, %v3659_v39 }
 0xbeb   : > { %3669 = vst.msk [vmem:[#allocation2 + $0x8] sm:$0xff] %vm1083_vm2, %v3667_v40 }
 0xbf0   : > { %v3674_v41 = vld [vmem:[#allocation2] sm:$0x1] }
 0xbf1   : > { %v3676_v61 = vpack.c.bf16 %v3674_v41, %v3674_v41 }
 0xbf2   : > { %v3675_v42 = vld [vmem:[#allocation2 + $0x8] sm:$0x1] }
 0xbf3   : > { %v3677_v37 = vpack.c.bf16 %v3675_v42, %v3675_v42  ;;  %v3691_v14 = vunpack.c.l.b16 %v3676_v61 }
 0xbf5   : > { %v3692_v26 = vunpack.c.l.b16 %v3677_v37 }
 0xbf7   : > { %v3693_v48 = vrot.slane %v3692_v26, 7 }
 0xbf9   : > { %v3695_v49 = vsel %vm3694_vm8, %v3693_v48, %v3691_v14 }
 0xbfa   : > { %v3696_v50 = vpack.c.b16 %v3695_v49, %v3695_v49 }
 0xbfc   : > { %4349 = vmatmul.mubr.msk.bf16.vlgmr.msra.gmra.mrb[0].mxu0 %vm1083_vm2, %v3696_v50 }
 0xccf   : > { %v3746_v20 = vpop.f32.mrb[0].mxu0 }
 0xcd0   : > { %v3747_v47 = vadd.f32 %v4109_v46, %v3746_v20  ;;  %v4350_v52 = vpop.f32.mrb[1].mxu0 }
 0xcd1   : > { %v3749_v30 = vpop.f32.mrb[2].mxu0 }
 0xcd2   : > { %4488 = vtanh.f32 %v3747_v47  ;;  %v4351_v59 = vpop.f32.mrb[3].mxu0 }
 0xcdc   : > { %v4489_v54 = vpop.eup %4488 }
 0xcdd   : > { %3754 = vst.msk [vmem:[#allocation4] sm:$0x3] %vm3753_vm9, %v4489_v54 }
 0xcde PF: > { %s5450_s20 = sld [smem:[#allocation10_spill]]  ;;  %s4586_s25 = smov [#allocation2]  }
 0xcdf   : > { %s3764_s22 = sshll.u32 %s4586_s25, 4  ;;  %s4587_s5 = smov [#allocation4]   ;;  %s3765_s22 = int_to_ptr.vmem [resolvable:$true] %s3764_s22 }
 0xce0   : > { %s3780_s2 = sshll.u32 %s4587_s5, 4  ;;  %s4490_s19 = scalar_lea.vmem %s3765_s22, 256  ;;  %s3781_s2 = int_to_ptr.vmem [resolvable:$true] %s3780_s2 }
 0xce1   : > { %p4491_p8 = scmp.ne.s32.totalorder %s3765_s22, %s4490_s19  ;;  %p4497_p11 = scmp.lt.s32.totalorder %s3765_s22, %s3765_s22 }
 0xce2   : > { %p4498_p12 = scmp.lt.s32.totalorder %s4490_s19, %s4490_s19 }
 0xce4   : > { %s5451_s28 = sadd.s32 4294967295, %s5450_s20   ;;  %p4499_p13 = por %p4498_p12, %p4497_p11 }
 0xce5   : > { %p5315_p7 = scmp.eq.s32.totalorder %s5451_s28, 1 }
 0xce7   : > { %p4492_p9 = pnand %p4491_p8, %p5315_p7 }
 0xce9   : > { %p4493_p10 = pneg %p4492_p9 }
 0xceb   : > { %p4500_p0 = pnand %p4499_p13, %p4493_p10 }
 0xced   : > { %4503 = shalt.err (!%p4500_p0)
}
 0xcee   : > { %s5453_s26 = sld [smem:[#allocation26_spill]] }
 0xcf4   : > { %s4504_s7 = scalar_lea.hbm %s5453_s26, 256 }
 0xcf5   : > { %p4505_p1 = scmp.ne.s32.totalorder %s5453_s26, %s4504_s7  ;;  %p4510_p4 = scmp.lt.u32.totalorder %s4504_s7, %s5453_s26 }
 0xcf7   : > { %p4506_p2 = pnand %p4505_p1, %p5315_p7 }
 0xcf9   : > { %p4507_p3 = pneg %p4506_p2 }
 0xcfb   : > { %p4512_p5 = pnand %p4510_p4, %p4507_p3 }
 0xcfd   : > { %4515 = shalt.err (!%p4512_p5)
}
 0xcfe   : > { %s4588_s1 = smov 128   ;;  %s4516_s10 = scalar_lea.vmem %s3781_s2, 32 }
 0xcff   : > { %4353 = dma.vmem_to_hbm [thread:$0]  (%p5315_p7), %s3765_s22, 256, %s5453_s26, [#allocation3], %s4588_s1, %s4588_s1, %s4582_s0  }
 0xd00   : > { %p4517_p6 = scmp.ne.s32.totalorder %s3781_s2, %s4516_s10  ;;  %p4523_p10 = scmp.lt.s32.totalorder %s3781_s2, %s3781_s2 }
 0xd01   : > { %p4524_p11 = scmp.lt.s32.totalorder %s4516_s10, %s4516_s10 }
 0xd02   : > { %p4518_p8 = pnand %p4517_p6, %p5315_p7 }
 0xd03   : > { %p4525_p12 = por %p4524_p11, %p4523_p10 }
 0xd04   : > { %p4519_p9 = pneg %p4518_p8 }
 0xd06   : > { %p4526_p13 = pnand %p4525_p12, %p4519_p9 }
 0xd08   : > { %4529 = shalt.err (!%p4526_p13)
}
 0xd09   : > { %s5454_s25 = sld [smem:[#allocation27_spill]] }
 0xd0f   : > { %s4530_s5 = scalar_lea.hbm %s5454_s25, 32 }
 0xd10   : > { %p4531_p0 = scmp.ne.s32.totalorder %s5454_s25, %s4530_s5  ;;  %p4536_p3 = scmp.lt.u32.totalorder %s4530_s5, %s5454_s25 }
 0xd12   : > { %p4532_p1 = pnand %p4531_p0, %p5315_p7 }
 0xd14   : > { %p4533_p2 = pneg %p4532_p1 }
 0xd16   : > { %p4538_p4 = pnand %p4536_p3, %p4533_p2 }
 0xd18   : > { %4541 = shalt.err (!%p4538_p4)
}
 0xd19   : > { %4355 = dma.vmem_to_hbm [thread:$0]  (%p5315_p7), %s3781_s2, 32, %s5454_s25, [#allocation5]  }
 0xd1a   : > { %4555 = dma.done.wait (%p5315_p7), [#allocation3], 256  }
 0xd1b   : > { %4557 = vsyncadd (%p5315_p7), [#allocation3], 4294967040 }
 0xd1c   : > { %4559 = dma.done.wait (%p5315_p7), [#allocation5], 32  }
 0xd1d   : > { %4561 = vsyncadd (%p5315_p7), [#allocation5], 4294967264 }
 0xd1e PF: > { %s5455_s6 = sld [smem:[#allocation10_spill]]  ;;  %s5456_s4 = sld [smem:[#allocation9_spill]] }
 0xd1f   : > { %s5457_s30 = sld [smem:[#allocation11_spill]] }
 0xd24   : > { %s36_s24 = sadd.s32 1, %s5455_s6  }
 0xd25   : > { %p33_p5 = scmp.ge.s32.totalorder %s36_s24, 4  }
 0xd27   :  { %35 = sbr.rel (!%p33_p5) target bundleno = 20 (0x14), region = 204 }
 0xd2e   :  { %3797 = vsyncpa [#allocation3], 1 }
 0xd2f   :  { %3799 = vsyncpa [#allocation3 + $0x1], 1 }
 0xd30   :  { %3800 = vsyncpa [#allocation5], 1 }

</bundles_post_ra>
